<compile_context>
chip_gen: v7x
topology: tpu7x:2x2x1
jax: 0.10.0
libtpu: 0.0.40
codegen_flags: <defaults>
</compile_context>

<pallas_src>
import functools

import jax
import jax.numpy as jnp
from jax import lax
from jax.experimental import pallas as pl
from jax.experimental.pallas import tpu as pltpu

THRESHOLD = 1.0


def _snn_kernel(x_ref, w_ref, b_ref, o_ref, v_ref, *, offs):
    """Fused Conv2d(3x3, pad=1) + IAF over a block of tile_t timesteps.

    x_ref : (1, tile_t, C_in, L)      f32  zero-padded input, spatial flattened;
                                           L = (H+3)*(W+2)
    w_ref : (C_out_g, 9*C_in)         f32  tap-stacked conv weight (K = (ky*3+kx)*C_in+ci)
    b_ref : (C_out_g, 1)              f32  conv bias (this channel group)
    o_ref : (1, tile_t, C_out_g, S)   f32  spike counts, S = H*(W+2)
    v_ref : (C_out_g, S)              f32  VMEM scratch: membrane potential carried
                                           across the innermost (time) grid axis
    """
    tile_t = x_ref.shape[1]
    c_out_g, s = o_ref.shape[2], o_ref.shape[3]

    # New (batch, channel-group) stream -> reset the membrane state.
    @pl.when(pl.program_id(2) == 0)
    def _():
        v_ref[...] = jnp.zeros_like(v_ref)

    # Hoisted once per grid step (JAX does not CSE broadcast_in_dim).
    bias = jnp.broadcast_to(b_ref[...], (c_out_g, s))
    w_stk = w_ref[...]                                   # resident (C_out_g, 9*C_in)

    # ---- Phase 1: conv for every timestep of the block (MXU only) -------------
    # Conv outputs are staged directly into o_ref (not kept live in registers), so
    # vreg pressure stays O(1) per timestep regardless of tile_t.
    for t in range(tile_t):
        x_t = x_ref[0, t]                                # (C_in, L)
        x_stk = jnp.concatenate(                         # (9*C_in, S), sublane-stacked
            [x_t[:, off:off + s] for off in offs], axis=0)
        o_ref[0, t] = bias + jnp.dot(w_stk, x_stk,
                                     preferred_element_type=jnp.float32)

    # ---- Phase 2: IAF recurrence (pure VPU, no matmuls) ------------------------
    # sinabs IAF defaults: MultiSpike (floor(v/threshold) spikes) + MembraneSubtract.
    v = v_ref[...]
    for t in range(tile_t):
        v = v + o_ref[0, t]
        spk = jnp.maximum(jnp.floor(v * (1.0 / THRESHOLD)), 0.0)
        o_ref[0, t] = spk                                # lane-dense store (last dim = S)
        v = v - spk * THRESHOLD
    v_ref[...] = v


def _pick_tile_t(num_timesteps, bytes_per_t, vmem_budget_bytes, max_tile=32):
    """Largest divisor of T such that tile_t*bytes_per_t fits the VMEM budget."""
    cap = max(1, min(max_tile, vmem_budget_bytes // max(bytes_per_t, 1)))
    best = 1
    for d in range(1, num_timesteps + 1):
        if num_timesteps % d == 0 and d <= cap:
            best = d
    return best


@functools.partial(jax.jit,
                   static_argnames=("batch_size", "num_timesteps", "channel_groups"))
def network_forward(x, conv_w, conv_b, *, batch_size, num_timesteps,
                    channel_groups=None):
    """Forward pass of Network(spiking_model)(x).

    x: (B*T, C_in, H, W) float32 NCHW.  conv_w: (C_out, C_in, 3, 3).  conv_b: (C_out,).
    Returns spike counts of shape (B*T, C_out, H, W) (NCHW, like the PyTorch model).
    """
    bt, c_in, h, w = x.shape
    assert bt == batch_size * num_timesteps
    c_out = conv_w.shape[0]
    wp = w + 2
    s = h * wp                        # lane extent used inside the kernel
    l = (h + 3) * wp                  # single fused pad: H pad (1,2) covers the tail
                                      # the last (dy=2,dx=2) tap needs; W pad (1,1)

    # v7x megacore: second "parallel" grid axis over output-channel groups so both
    # TensorCores stay busy when batch_size is small/odd (no halo logic needed since
    # the membrane state is per-channel).
    if channel_groups is None:
        channel_groups = 2 if (batch_size % 2 == 1 and c_out % 2 == 0
                               and (c_out // 2) % 8 == 0) else 1
    assert c_out % channel_groups == 0
    c_out_g = c_out // channel_groups
    if channel_groups > 1:
        assert c_out_g % 8 == 0, "channel groups must be sublane-aligned"

    # tile_t: largest divisor of T whose double-buffered in+out blocks stay well
    # under the v7x 32 MiB scoped-VMEM default (v5e/v6e have 2x physical headroom).
    bytes_per_t = 2 * 4 * (c_in * l + c_out_g * s)
    tile_t = _pick_tile_t(num_timesteps, bytes_per_t, vmem_budget_bytes=8 << 20)

    # Lightweight glue (single pad pass, no im2col expansion in HBM).
    x5 = x.reshape(batch_size, num_timesteps, c_in, h, w).astype(jnp.float32)
    xpad = jnp.pad(x5, ((0, 0), (0, 0), (0, 0), (1, 2), (1, 1)))
    xflat = xpad.reshape(batch_size, num_timesteps, c_in, l)

    # Tap-stacked weights: (C_out, 9*C_in) with K index = (ky*3+kx)*C_in + ci.
    w_stk = conv_w.transpose(0, 2, 3, 1).reshape(c_out, 9 * c_in).astype(jnp.float32)
    b_col = conv_b.reshape(c_out, 1).astype(jnp.float32)

    offs = tuple(dy * wp + dx for dy in range(3) for dx in range(3))

    spikes = pl.pallas_call(
        functools.partial(_snn_kernel, offs=offs),
        out_shape=jax.ShapeDtypeStruct(
            (batch_size, num_timesteps, c_out, s), jnp.float32),
        grid_spec=pltpu.PrefetchScalarGridSpec(
            num_scalar_prefetch=0,
            grid=(batch_size, channel_groups, num_timesteps // tile_t),
            in_specs=[
                pl.BlockSpec((1, tile_t, c_in, l), lambda b, cg, t: (b, t, 0, 0)),
                pl.BlockSpec((c_out_g, 9 * c_in), lambda b, cg, t: (cg, 0)),
                pl.BlockSpec((c_out_g, 1), lambda b, cg, t: (cg, 0)),
            ],
            out_specs=pl.BlockSpec((1, tile_t, c_out_g, s),
                                   lambda b, cg, t: (b, t, cg, 0)),
            scratch_shapes=[pltpu.VMEM((c_out_g, s), jnp.float32)],
        ),
        compiler_params=pltpu.CompilerParams(
            dimension_semantics=("parallel", "parallel", "arbitrary")),
    )(xflat, w_stk, b_col)

    # Kernel output is already channel-major NCHW with 2 padding columns per row.
    # TODO(synk): compact to H*W lanes inside the kernel to drop this crop pass; a
    # 0/1 selection matmul was rejected here to keep the f32 bit-exact self-check.
    out = spikes.reshape(batch_size * num_timesteps, c_out, h, wp)
    return out[:, :, :, :w]


def _reference_forward(x, conv_w, conv_b, *, batch_size, num_timesteps):
    """Pure-JAX reference (XLA conv + IAF scan) for verification."""
    bt, c_in, h, w = x.shape
    c_out = conv_w.shape[0]
    z = lax.conv_general_dilated(
        x.astype(jnp.float32), conv_w.astype(jnp.float32),
        window_strides=(1, 1), padding=((1, 1), (1, 1)),
        dimension_numbers=("NCHW", "OIHW", "NCHW"),
    ) + conv_b.reshape(1, c_out, 1, 1)
    z = z.reshape(batch_size, num_timesteps, c_out, h, w)

    def step(v, zt):
        v = v + zt
        spk = jnp.maximum(jnp.floor(v / THRESHOLD), 0.0)
        return v - spk * THRESHOLD, spk

    def per_batch(zb):
        _, spk = lax.scan(step, jnp.zeros((c_out, h, w), jnp.float32), zb)
        return spk

    spikes = jax.vmap(per_batch)(z)
    return spikes.reshape(batch_size * num_timesteps, c_out, h, w)


if __name__ == "__main__":
    def run_case(B, T, C_IN, C_OUT, H, W, seed):
        key = jax.random.PRNGKey(seed)
        kx, kw, kb = jax.random.split(key, 3)
        # Quantize inputs/weights to multiples of 1/64 (bf16/f32-exact), so the Pallas
        # kernel and the XLA reference compute bit-exact results — the spike
        # nonlinearity is discontinuous, so exact arithmetic keeps the compare robust.
        x = jnp.round(
            64.0 * jax.random.uniform(kx, (B * T, C_IN, H, W), jnp.float32)) / 64.0
        cw = jnp.round(
            64.0 * 0.3 * jax.random.normal(kw, (C_OUT, C_IN, 3, 3), jnp.float32)) / 64.0
        cb = jnp.round(
            64.0 * 0.05 * jax.random.normal(kb, (C_OUT,), jnp.float32)) / 64.0

        out = network_forward(x, cw, cb, batch_size=B, num_timesteps=T)
        out = jax.block_until_ready(out)
        ref = _reference_forward(x, cw, cb, batch_size=B, num_timesteps=T)
        assert out.shape == (B * T, C_OUT, H, W)
        assert jnp.allclose(out, ref, atol=1e-5), "mismatch vs reference"

    # Primary config: batch-parallel path (tile_t = T = 8, single grid step per batch).
    run_case(B=2, T=8, C_IN=8, C_OUT=8, H=16, W=16, seed=0)
    # Small/odd-batch config exercising the channel-group "parallel" axis (v7x 2-TC).
    run_case(B=1, T=4, C_IN=8, C_OUT=16, H=8, W=8, seed=1)

    print("KERNEL_OK")
</pallas_src>

<mosaic_0001>
module attributes {stable_mosaic.version = 11 : i64} {
  func.func @_snn_kernel(%arg0: i32, %arg1: i32, %arg2: i32, %arg3: memref<1x8x8x342xf32, #tpu.memory_space<vmem>>, %arg4: memref<8x72xf32, #tpu.memory_space<vmem>>, %arg5: memref<8x1xf32, #tpu.memory_space<vmem>>, %arg6: memref<1x8x8x288xf32, #tpu.memory_space<vmem>>, %arg7: memref<8x288xf32, #tpu.memory_space<vmem>>) attributes {dimension_semantics = [#tpu.dimension_semantics<parallel>, #tpu.dimension_semantics<parallel>, #tpu.dimension_semantics<arbitrary>], iteration_bounds = array<i64: 2, 1, 1>, scalar_prefetch = 0 : i64, scratch_operands = 1 : i64, tpu.core_type = #tpu.core_type<tc>, window_params = [{transform_indices = @transform_0, window_bounds = array<i64: 1, 8, 8, 342>}, {transform_indices = @transform_1, window_bounds = array<i64: 8, 72>}, {transform_indices = @transform_2, window_bounds = array<i64: 8, 1>}, {transform_indices = @transform_3, window_bounds = array<i64: 1, 8, 8, 288>}]} {
    %c0_i32 = arith.constant 0 : i32
    %0 = arith.cmpi eq, %arg2, %c0_i32 : i32
    %1 = arith.extui %0 : i1 to i32
    %c0_i32_0 = arith.constant 0 : i32
    %2 = arith.cmpi ne, %1, %c0_i32_0 : i32
    scf.if %2 {
      %cst_160 = arith.constant 0.000000e+00 : f32
      %257 = vector.broadcast %cst_160 : f32 to vector<8x288xf32>
      %c0_161 = arith.constant 0 : index
      %c0_162 = arith.constant 0 : index
      %258 = vector.load %arg7[%c0_161, %c0_162] : memref<8x288xf32, #tpu.memory_space<vmem>>, vector<8x288xf32>
      tpu.vector_store %arg7[%c0_161, %c0_162], %257 {strides = array<i32>} : memref<8x288xf32, #tpu.memory_space<vmem>>, vector<8x288xf32>,
    } else {
    }
    %c0 = arith.constant 0 : index
    %c0_1 = arith.constant 0 : index
    %3 = vector.load %arg5[%c0, %c0_1] : memref<8x1xf32, #tpu.memory_space<vmem>>, vector<8x1xf32>
    %4 = vector.shape_cast %3 : vector<8x1xf32> to vector<8x1xf32>
    %5 = vector.broadcast %4 : vector<8x1xf32> to vector<8x288xf32>
    %c0_2 = arith.constant 0 : index
    %c0_3 = arith.constant 0 : index
    %6 = vector.load %arg4[%c0_2, %c0_3] : memref<8x72xf32, #tpu.memory_space<vmem>>, vector<8x72xf32>
    %c0_4 = arith.constant 0 : index
    %c0_5 = arith.constant 0 : index
    %c0_6 = arith.constant 0 : index
    %c0_7 = arith.constant 0 : index
    %7 = vector.load %arg3[%c0_4, %c0_5, %c0_6, %c0_7] : memref<1x8x8x342xf32, #tpu.memory_space<vmem>>, vector<1x1x8x342xf32>
    %8 = vector.shape_cast %7 : vector<1x1x8x342xf32> to vector<8x342xf32>
    %9 = vector.extract_strided_slice %8 {offsets = [0, 0], sizes = [8, 288], strides = [1, 1]} : vector<8x342xf32> to vector<8x288xf32>
    %10 = vector.extract_strided_slice %8 {offsets = [0, 1], sizes = [8, 288], strides = [1, 1]} : vector<8x342xf32> to vector<8x288xf32>
    %11 = vector.extract_strided_slice %8 {offsets = [0, 2], sizes = [8, 288], strides = [1, 1]} : vector<8x342xf32> to vector<8x288xf32>
    %12 = vector.extract_strided_slice %8 {offsets = [0, 18], sizes = [8, 288], strides = [1, 1]} : vector<8x342xf32> to vector<8x288xf32>
    %13 = vector.extract_strided_slice %8 {offsets = [0, 19], sizes = [8, 288], strides = [1, 1]} : vector<8x342xf32> to vector<8x288xf32>
    %14 = vector.extract_strided_slice %8 {offsets = [0, 20], sizes = [8, 288], strides = [1, 1]} : vector<8x342xf32> to vector<8x288xf32>
    %15 = vector.extract_strided_slice %8 {offsets = [0, 36], sizes = [8, 288], strides = [1, 1]} : vector<8x342xf32> to vector<8x288xf32>
    %16 = vector.extract_strided_slice %8 {offsets = [0, 37], sizes = [8, 288], strides = [1, 1]} : vector<8x342xf32> to vector<8x288xf32>
    %17 = vector.extract_strided_slice %8 {offsets = [0, 38], sizes = [8, 288], strides = [1, 1]} : vector<8x342xf32> to vector<8x288xf32>
    %18 = tpu.concatenate %9, %10, %11, %12, %13, %14, %15, %16, %17 in 0 : vector<8x288xf32>, vector<8x288xf32>, vector<8x288xf32>, vector<8x288xf32>, vector<8x288xf32>, vector<8x288xf32>, vector<8x288xf32>, vector<8x288xf32>, vector<8x288xf32> -> vector<72x288xf32>
    %cst = arith.constant dense<0.000000e+00> : vector<8x288xf32>
    %19 = tpu.matmul %6, %18, %cst {dimension_numbers = #tpu.dot_dimension_numbers<[1], [0], [0], [1], [0, 0, 1, 1], [], []>} : vector<8x72xf32>, vector<72x288xf32>, vector<8x288xf32> -> vector<8x288xf32>
    %20 = arith.addf %5, %19 : vector<8x288xf32>
    %c0_8 = arith.constant 0 : index
    %c0_9 = arith.constant 0 : index
    %c0_10 = arith.constant 0 : index
    %c0_11 = arith.constant 0 : index
    %21 = vector.load %arg6[%c0_8, %c0_9, %c0_10, %c0_11] : memref<1x8x8x288xf32, #tpu.memory_space<vmem>>, vector<1x1x8x288xf32>
    %22 = vector.shape_cast %21 : vector<1x1x8x288xf32> to vector<8x288xf32>
    %23 = vector.shape_cast %20 : vector<8x288xf32> to vector<1x1x8x288xf32>
    tpu.vector_store %arg6[%c0_8, %c0_9, %c0_10, %c0_11], %23 {strides = array<i32>} : memref<1x8x8x288xf32, #tpu.memory_space<vmem>>, vector<1x1x8x288xf32>,
    %c0_12 = arith.constant 0 : index
    %c1 = arith.constant 1 : index
    %c0_13 = arith.constant 0 : index
    %c0_14 = arith.constant 0 : index
    %24 = vector.load %arg3[%c0_12, %c1, %c0_13, %c0_14] : memref<1x8x8x342xf32, #tpu.memory_space<vmem>>, vector<1x1x8x342xf32>
    %25 = vector.shape_cast %24 : vector<1x1x8x342xf32> to vector<8x342xf32>
    %26 = vector.extract_strided_slice %25 {offsets = [0, 0], sizes = [8, 288], strides = [1, 1]} : vector<8x342xf32> to vector<8x288xf32>
    %27 = vector.extract_strided_slice %25 {offsets = [0, 1], sizes = [8, 288], strides = [1, 1]} : vector<8x342xf32> to vector<8x288xf32>
    %28 = vector.extract_strided_slice %25 {offsets = [0, 2], sizes = [8, 288], strides = [1, 1]} : vector<8x342xf32> to vector<8x288xf32>
    %29 = vector.extract_strided_slice %25 {offsets = [0, 18], sizes = [8, 288], strides = [1, 1]} : vector<8x342xf32> to vector<8x288xf32>
    %30 = vector.extract_strided_slice %25 {offsets = [0, 19], sizes = [8, 288], strides = [1, 1]} : vector<8x342xf32> to vector<8x288xf32>
    %31 = vector.extract_strided_slice %25 {offsets = [0, 20], sizes = [8, 288], strides = [1, 1]} : vector<8x342xf32> to vector<8x288xf32>
    %32 = vector.extract_strided_slice %25 {offsets = [0, 36], sizes = [8, 288], strides = [1, 1]} : vector<8x342xf32> to vector<8x288xf32>
    %33 = vector.extract_strided_slice %25 {offsets = [0, 37], sizes = [8, 288], strides = [1, 1]} : vector<8x342xf32> to vector<8x288xf32>
    %34 = vector.extract_strided_slice %25 {offsets = [0, 38], sizes = [8, 288], strides = [1, 1]} : vector<8x342xf32> to vector<8x288xf32>
    %35 = tpu.concatenate %26, %27, %28, %29, %30, %31, %32, %33, %34 in 0 : vector<8x288xf32>, vector<8x288xf32>, vector<8x288xf32>, vector<8x288xf32>, vector<8x288xf32>, vector<8x288xf32>, vector<8x288xf32>, vector<8x288xf32>, vector<8x288xf32> -> vector<72x288xf32>
    %cst_15 = arith.constant dense<0.000000e+00> : vector<8x288xf32>
    %36 = tpu.matmul %6, %35, %cst_15 {dimension_numbers = #tpu.dot_dimension_numbers<[1], [0], [0], [1], [0, 0, 1, 1], [], []>} : vector<8x72xf32>, vector<72x288xf32>, vector<8x288xf32> -> vector<8x288xf32>
    %37 = arith.addf %5, %36 : vector<8x288xf32>
    %c0_16 = arith.constant 0 : index
    %c1_17 = arith.constant 1 : index
    %c0_18 = arith.constant 0 : index
    %c0_19 = arith.constant 0 : index
    %38 = vector.load %arg6[%c0_16, %c1_17, %c0_18, %c0_19] : memref<1x8x8x288xf32, #tpu.memory_space<vmem>>, vector<1x1x8x288xf32>
    %39 = vector.shape_cast %38 : vector<1x1x8x288xf32> to vector<8x288xf32>
    %40 = vector.shape_cast %37 : vector<8x288xf32> to vector<1x1x8x288xf32>
    tpu.vector_store %arg6[%c0_16, %c1_17, %c0_18, %c0_19], %40 {strides = array<i32>} : memref<1x8x8x288xf32, #tpu.memory_space<vmem>>, vector<1x1x8x288xf32>,
    %c0_20 = arith.constant 0 : index
    %c2 = arith.constant 2 : index
    %c0_21 = arith.constant 0 : index
    %c0_22 = arith.constant 0 : index
    %41 = vector.load %arg3[%c0_20, %c2, %c0_21, %c0_22] : memref<1x8x8x342xf32, #tpu.memory_space<vmem>>, vector<1x1x8x342xf32>
    %42 = vector.shape_cast %41 : vector<1x1x8x342xf32> to vector<8x342xf32>
    %43 = vector.extract_strided_slice %42 {offsets = [0, 0], sizes = [8, 288], strides = [1, 1]} : vector<8x342xf32> to vector<8x288xf32>
    %44 = vector.extract_strided_slice %42 {offsets = [0, 1], sizes = [8, 288], strides = [1, 1]} : vector<8x342xf32> to vector<8x288xf32>
    %45 = vector.extract_strided_slice %42 {offsets = [0, 2], sizes = [8, 288], strides = [1, 1]} : vector<8x342xf32> to vector<8x288xf32>
    %46 = vector.extract_strided_slice %42 {offsets = [0, 18], sizes = [8, 288], strides = [1, 1]} : vector<8x342xf32> to vector<8x288xf32>
    %47 = vector.extract_strided_slice %42 {offsets = [0, 19], sizes = [8, 288], strides = [1, 1]} : vector<8x342xf32> to vector<8x288xf32>
    %48 = vector.extract_strided_slice %42 {offsets = [0, 20], sizes = [8, 288], strides = [1, 1]} : vector<8x342xf32> to vector<8x288xf32>
    %49 = vector.extract_strided_slice %42 {offsets = [0, 36], sizes = [8, 288], strides = [1, 1]} : vector<8x342xf32> to vector<8x288xf32>
    %50 = vector.extract_strided_slice %42 {offsets = [0, 37], sizes = [8, 288], strides = [1, 1]} : vector<8x342xf32> to vector<8x288xf32>
    %51 = vector.extract_strided_slice %42 {offsets = [0, 38], sizes = [8, 288], strides = [1, 1]} : vector<8x342xf32> to vector<8x288xf32>
    %52 = tpu.concatenate %43, %44, %45, %46, %47, %48, %49, %50, %51 in 0 : vector<8x288xf32>, vector<8x288xf32>, vector<8x288xf32>, vector<8x288xf32>, vector<8x288xf32>, vector<8x288xf32>, vector<8x288xf32>, vector<8x288xf32>, vector<8x288xf32> -> vector<72x288xf32>
    %cst_23 = arith.constant dense<0.000000e+00> : vector<8x288xf32>
    %53 = tpu.matmul %6, %52, %cst_23 {dimension_numbers = #tpu.dot_dimension_numbers<[1], [0], [0], [1], [0, 0, 1, 1], [], []>} : vector<8x72xf32>, vector<72x288xf32>, vector<8x288xf32> -> vector<8x288xf32>
    %54 = arith.addf %5, %53 : vector<8x288xf32>
    %c0_24 = arith.constant 0 : index
    %c2_25 = arith.constant 2 : index
    %c0_26 = arith.constant 0 : index
    %c0_27 = arith.constant 0 : index
    %55 = vector.load %arg6[%c0_24, %c2_25, %c0_26, %c0_27] : memref<1x8x8x288xf32, #tpu.memory_space<vmem>>, vector<1x1x8x288xf32>
    %56 = vector.shape_cast %55 : vector<1x1x8x288xf32> to vector<8x288xf32>
    %57 = vector.shape_cast %54 : vector<8x288xf32> to vector<1x1x8x288xf32>
    tpu.vector_store %arg6[%c0_24, %c2_25, %c0_26, %c0_27], %57 {strides = array<i32>} : memref<1x8x8x288xf32, #tpu.memory_space<vmem>>, vector<1x1x8x288xf32>,
    %c0_28 = arith.constant 0 : index
    %c3 = arith.constant 3 : index
    %c0_29 = arith.constant 0 : index
    %c0_30 = arith.constant 0 : index
    %58 = vector.load %arg3[%c0_28, %c3, %c0_29, %c0_30] : memref<1x8x8x342xf32, #tpu.memory_space<vmem>>, vector<1x1x8x342xf32>
    %59 = vector.shape_cast %58 : vector<1x1x8x342xf32> to vector<8x342xf32>
    %60 = vector.extract_strided_slice %59 {offsets = [0, 0], sizes = [8, 288], strides = [1, 1]} : vector<8x342xf32> to vector<8x288xf32>
    %61 = vector.extract_strided_slice %59 {offsets = [0, 1], sizes = [8, 288], strides = [1, 1]} : vector<8x342xf32> to vector<8x288xf32>
    %62 = vector.extract_strided_slice %59 {offsets = [0, 2], sizes = [8, 288], strides = [1, 1]} : vector<8x342xf32> to vector<8x288xf32>
    %63 = vector.extract_strided_slice %59 {offsets = [0, 18], sizes = [8, 288], strides = [1, 1]} : vector<8x342xf32> to vector<8x288xf32>
    %64 = vector.extract_strided_slice %59 {offsets = [0, 19], sizes = [8, 288], strides = [1, 1]} : vector<8x342xf32> to vector<8x288xf32>
    %65 = vector.extract_strided_slice %59 {offsets = [0, 20], sizes = [8, 288], strides = [1, 1]} : vector<8x342xf32> to vector<8x288xf32>
    %66 = vector.extract_strided_slice %59 {offsets = [0, 36], sizes = [8, 288], strides = [1, 1]} : vector<8x342xf32> to vector<8x288xf32>
    %67 = vector.extract_strided_slice %59 {offsets = [0, 37], sizes = [8, 288], strides = [1, 1]} : vector<8x342xf32> to vector<8x288xf32>
    %68 = vector.extract_strided_slice %59 {offsets = [0, 38], sizes = [8, 288], strides = [1, 1]} : vector<8x342xf32> to vector<8x288xf32>
    %69 = tpu.concatenate %60, %61, %62, %63, %64, %65, %66, %67, %68 in 0 : vector<8x288xf32>, vector<8x288xf32>, vector<8x288xf32>, vector<8x288xf32>, vector<8x288xf32>, vector<8x288xf32>, vector<8x288xf32>, vector<8x288xf32>, vector<8x288xf32> -> vector<72x288xf32>
    %cst_31 = arith.constant dense<0.000000e+00> : vector<8x288xf32>
    %70 = tpu.matmul %6, %69, %cst_31 {dimension_numbers = #tpu.dot_dimension_numbers<[1], [0], [0], [1], [0, 0, 1, 1], [], []>} : vector<8x72xf32>, vector<72x288xf32>, vector<8x288xf32> -> vector<8x288xf32>
    %71 = arith.addf %5, %70 : vector<8x288xf32>
    %c0_32 = arith.constant 0 : index
    %c3_33 = arith.constant 3 : index
    %c0_34 = arith.constant 0 : index
    %c0_35 = arith.constant 0 : index
    %72 = vector.load %arg6[%c0_32, %c3_33, %c0_34, %c0_35] : memref<1x8x8x288xf32, #tpu.memory_space<vmem>>, vector<1x1x8x288xf32>
    %73 = vector.shape_cast %72 : vector<1x1x8x288xf32> to vector<8x288xf32>
    %74 = vector.shape_cast %71 : vector<8x288xf32> to vector<1x1x8x288xf32>
    tpu.vector_store %arg6[%c0_32, %c3_33, %c0_34, %c0_35], %74 {strides = array<i32>} : memref<1x8x8x288xf32, #tpu.memory_space<vmem>>, vector<1x1x8x288xf32>,
    %c0_36 = arith.constant 0 : index
    %c4 = arith.constant 4 : index
    %c0_37 = arith.constant 0 : index
    %c0_38 = arith.constant 0 : index
    %75 = vector.load %arg3[%c0_36, %c4, %c0_37, %c0_38] : memref<1x8x8x342xf32, #tpu.memory_space<vmem>>, vector<1x1x8x342xf32>
    %76 = vector.shape_cast %75 : vector<1x1x8x342xf32> to vector<8x342xf32>
    %77 = vector.extract_strided_slice %76 {offsets = [0, 0], sizes = [8, 288], strides = [1, 1]} : vector<8x342xf32> to vector<8x288xf32>
    %78 = vector.extract_strided_slice %76 {offsets = [0, 1], sizes = [8, 288], strides = [1, 1]} : vector<8x342xf32> to vector<8x288xf32>
    %79 = vector.extract_strided_slice %76 {offsets = [0, 2], sizes = [8, 288], strides = [1, 1]} : vector<8x342xf32> to vector<8x288xf32>
    %80 = vector.extract_strided_slice %76 {offsets = [0, 18], sizes = [8, 288], strides = [1, 1]} : vector<8x342xf32> to vector<8x288xf32>
    %81 = vector.extract_strided_slice %76 {offsets = [0, 19], sizes = [8, 288], strides = [1, 1]} : vector<8x342xf32> to vector<8x288xf32>
    %82 = vector.extract_strided_slice %76 {offsets = [0, 20], sizes = [8, 288], strides = [1, 1]} : vector<8x342xf32> to vector<8x288xf32>
    %83 = vector.extract_strided_slice %76 {offsets = [0, 36], sizes = [8, 288], strides = [1, 1]} : vector<8x342xf32> to vector<8x288xf32>
    %84 = vector.extract_strided_slice %76 {offsets = [0, 37], sizes = [8, 288], strides = [1, 1]} : vector<8x342xf32> to vector<8x288xf32>
    %85 = vector.extract_strided_slice %76 {offsets = [0, 38], sizes = [8, 288], strides = [1, 1]} : vector<8x342xf32> to vector<8x288xf32>
    %86 = tpu.concatenate %77, %78, %79, %80, %81, %82, %83, %84, %85 in 0 : vector<8x288xf32>, vector<8x288xf32>, vector<8x288xf32>, vector<8x288xf32>, vector<8x288xf32>, vector<8x288xf32>, vector<8x288xf32>, vector<8x288xf32>, vector<8x288xf32> -> vector<72x288xf32>
    %cst_39 = arith.constant dense<0.000000e+00> : vector<8x288xf32>
    %87 = tpu.matmul %6, %86, %cst_39 {dimension_numbers = #tpu.dot_dimension_numbers<[1], [0], [0], [1], [0, 0, 1, 1], [], []>} : vector<8x72xf32>, vector<72x288xf32>, vector<8x288xf32> -> vector<8x288xf32>
    %88 = arith.addf %5, %87 : vector<8x288xf32>
    %c0_40 = arith.constant 0 : index
    %c4_41 = arith.constant 4 : index
    %c0_42 = arith.constant 0 : index
    %c0_43 = arith.constant 0 : index
    %89 = vector.load %arg6[%c0_40, %c4_41, %c0_42, %c0_43] : memref<1x8x8x288xf32, #tpu.memory_space<vmem>>, vector<1x1x8x288xf32>
    %90 = vector.shape_cast %89 : vector<1x1x8x288xf32> to vector<8x288xf32>
    %91 = vector.shape_cast %88 : vector<8x288xf32> to vector<1x1x8x288xf32>
    tpu.vector_store %arg6[%c0_40, %c4_41, %c0_42, %c0_43], %91 {strides = array<i32>} : memref<1x8x8x288xf32, #tpu.memory_space<vmem>>, vector<1x1x8x288xf32>,
    %c0_44 = arith.constant 0 : index
    %c5 = arith.constant 5 : index
    %c0_45 = arith.constant 0 : index
    %c0_46 = arith.constant 0 : index
    %92 = vector.load %arg3[%c0_44, %c5, %c0_45, %c0_46] : memref<1x8x8x342xf32, #tpu.memory_space<vmem>>, vector<1x1x8x342xf32>
    %93 = vector.shape_cast %92 : vector<1x1x8x342xf32> to vector<8x342xf32>
    %94 = vector.extract_strided_slice %93 {offsets = [0, 0], sizes = [8, 288], strides = [1, 1]} : vector<8x342xf32> to vector<8x288xf32>
    %95 = vector.extract_strided_slice %93 {offsets = [0, 1], sizes = [8, 288], strides = [1, 1]} : vector<8x342xf32> to vector<8x288xf32>
    %96 = vector.extract_strided_slice %93 {offsets = [0, 2], sizes = [8, 288], strides = [1, 1]} : vector<8x342xf32> to vector<8x288xf32>
    %97 = vector.extract_strided_slice %93 {offsets = [0, 18], sizes = [8, 288], strides = [1, 1]} : vector<8x342xf32> to vector<8x288xf32>
    %98 = vector.extract_strided_slice %93 {offsets = [0, 19], sizes = [8, 288], strides = [1, 1]} : vector<8x342xf32> to vector<8x288xf32>
    %99 = vector.extract_strided_slice %93 {offsets = [0, 20], sizes = [8, 288], strides = [1, 1]} : vector<8x342xf32> to vector<8x288xf32>
    %100 = vector.extract_strided_slice %93 {offsets = [0, 36], sizes = [8, 288], strides = [1, 1]} : vector<8x342xf32> to vector<8x288xf32>
    %101 = vector.extract_strided_slice %93 {offsets = [0, 37], sizes = [8, 288], strides = [1, 1]} : vector<8x342xf32> to vector<8x288xf32>
    %102 = vector.extract_strided_slice %93 {offsets = [0, 38], sizes = [8, 288], strides = [1, 1]} : vector<8x342xf32> to vector<8x288xf32>
    %103 = tpu.concatenate %94, %95, %96, %97, %98, %99, %100, %101, %102 in 0 : vector<8x288xf32>, vector<8x288xf32>, vector<8x288xf32>, vector<8x288xf32>, vector<8x288xf32>, vector<8x288xf32>, vector<8x288xf32>, vector<8x288xf32>, vector<8x288xf32> -> vector<72x288xf32>
    %cst_47 = arith.constant dense<0.000000e+00> : vector<8x288xf32>
    %104 = tpu.matmul %6, %103, %cst_47 {dimension_numbers = #tpu.dot_dimension_numbers<[1], [0], [0], [1], [0, 0, 1, 1], [], []>} : vector<8x72xf32>, vector<72x288xf32>, vector<8x288xf32> -> vector<8x288xf32>
    %105 = arith.addf %5, %104 : vector<8x288xf32>
    %c0_48 = arith.constant 0 : index
    %c5_49 = arith.constant 5 : index
    %c0_50 = arith.constant 0 : index
    %c0_51 = arith.constant 0 : index
    %106 = vector.load %arg6[%c0_48, %c5_49, %c0_50, %c0_51] : memref<1x8x8x288xf32, #tpu.memory_space<vmem>>, vector<1x1x8x288xf32>
    %107 = vector.shape_cast %106 : vector<1x1x8x288xf32> to vector<8x288xf32>
    %108 = vector.shape_cast %105 : vector<8x288xf32> to vector<1x1x8x288xf32>
    tpu.vector_store %arg6[%c0_48, %c5_49, %c0_50, %c0_51], %108 {strides = array<i32>} : memref<1x8x8x288xf32, #tpu.memory_space<vmem>>, vector<1x1x8x288xf32>,
    %c0_52 = arith.constant 0 : index
    %c6 = arith.constant 6 : index
    %c0_53 = arith.constant 0 : index
    %c0_54 = arith.constant 0 : index
    %109 = vector.load %arg3[%c0_52, %c6, %c0_53, %c0_54] : memref<1x8x8x342xf32, #tpu.memory_space<vmem>>, vector<1x1x8x342xf32>
    %110 = vector.shape_cast %109 : vector<1x1x8x342xf32> to vector<8x342xf32>
    %111 = vector.extract_strided_slice %110 {offsets = [0, 0], sizes = [8, 288], strides = [1, 1]} : vector<8x342xf32> to vector<8x288xf32>
    %112 = vector.extract_strided_slice %110 {offsets = [0, 1], sizes = [8, 288], strides = [1, 1]} : vector<8x342xf32> to vector<8x288xf32>
    %113 = vector.extract_strided_slice %110 {offsets = [0, 2], sizes = [8, 288], strides = [1, 1]} : vector<8x342xf32> to vector<8x288xf32>
    %114 = vector.extract_strided_slice %110 {offsets = [0, 18], sizes = [8, 288], strides = [1, 1]} : vector<8x342xf32> to vector<8x288xf32>
    %115 = vector.extract_strided_slice %110 {offsets = [0, 19], sizes = [8, 288], strides = [1, 1]} : vector<8x342xf32> to vector<8x288xf32>
    %116 = vector.extract_strided_slice %110 {offsets = [0, 20], sizes = [8, 288], strides = [1, 1]} : vector<8x342xf32> to vector<8x288xf32>
    %117 = vector.extract_strided_slice %110 {offsets = [0, 36], sizes = [8, 288], strides = [1, 1]} : vector<8x342xf32> to vector<8x288xf32>
    %118 = vector.extract_strided_slice %110 {offsets = [0, 37], sizes = [8, 288], strides = [1, 1]} : vector<8x342xf32> to vector<8x288xf32>
    %119 = vector.extract_strided_slice %110 {offsets = [0, 38], sizes = [8, 288], strides = [1, 1]} : vector<8x342xf32> to vector<8x288xf32>
    %120 = tpu.concatenate %111, %112, %113, %114, %115, %116, %117, %118, %119 in 0 : vector<8x288xf32>, vector<8x288xf32>, vector<8x288xf32>, vector<8x288xf32>, vector<8x288xf32>, vector<8x288xf32>, vector<8x288xf32>, vector<8x288xf32>, vector<8x288xf32> -> vector<72x288xf32>
    %cst_55 = arith.constant dense<0.000000e+00> : vector<8x288xf32>
    %121 = tpu.matmul %6, %120, %cst_55 {dimension_numbers = #tpu.dot_dimension_numbers<[1], [0], [0], [1], [0, 0, 1, 1], [], []>} : vector<8x72xf32>, vector<72x288xf32>, vector<8x288xf32> -> vector<8x288xf32>
    %122 = arith.addf %5, %121 : vector<8x288xf32>
    %c0_56 = arith.constant 0 : index
    %c6_57 = arith.constant 6 : index
    %c0_58 = arith.constant 0 : index
    %c0_59 = arith.constant 0 : index
    %123 = vector.load %arg6[%c0_56, %c6_57, %c0_58, %c0_59] : memref<1x8x8x288xf32, #tpu.memory_space<vmem>>, vector<1x1x8x288xf32>
    %124 = vector.shape_cast %123 : vector<1x1x8x288xf32> to vector<8x288xf32>
    %125 = vector.shape_cast %122 : vector<8x288xf32> to vector<1x1x8x288xf32>
    tpu.vector_store %arg6[%c0_56, %c6_57, %c0_58, %c0_59], %125 {strides = array<i32>} : memref<1x8x8x288xf32, #tpu.memory_space<vmem>>, vector<1x1x8x288xf32>,
    %c0_60 = arith.constant 0 : index
    %c7 = arith.constant 7 : index
    %c0_61 = arith.constant 0 : index
    %c0_62 = arith.constant 0 : index
    %126 = vector.load %arg3[%c0_60, %c7, %c0_61, %c0_62] : memref<1x8x8x342xf32, #tpu.memory_space<vmem>>, vector<1x1x8x342xf32>
    %127 = vector.shape_cast %126 : vector<1x1x8x342xf32> to vector<8x342xf32>
    %128 = vector.extract_strided_slice %127 {offsets = [0, 0], sizes = [8, 288], strides = [1, 1]} : vector<8x342xf32> to vector<8x288xf32>
    %129 = vector.extract_strided_slice %127 {offsets = [0, 1], sizes = [8, 288], strides = [1, 1]} : vector<8x342xf32> to vector<8x288xf32>
    %130 = vector.extract_strided_slice %127 {offsets = [0, 2], sizes = [8, 288], strides = [1, 1]} : vector<8x342xf32> to vector<8x288xf32>
    %131 = vector.extract_strided_slice %127 {offsets = [0, 18], sizes = [8, 288], strides = [1, 1]} : vector<8x342xf32> to vector<8x288xf32>
    %132 = vector.extract_strided_slice %127 {offsets = [0, 19], sizes = [8, 288], strides = [1, 1]} : vector<8x342xf32> to vector<8x288xf32>
    %133 = vector.extract_strided_slice %127 {offsets = [0, 20], sizes = [8, 288], strides = [1, 1]} : vector<8x342xf32> to vector<8x288xf32>
    %134 = vector.extract_strided_slice %127 {offsets = [0, 36], sizes = [8, 288], strides = [1, 1]} : vector<8x342xf32> to vector<8x288xf32>
    %135 = vector.extract_strided_slice %127 {offsets = [0, 37], sizes = [8, 288], strides = [1, 1]} : vector<8x342xf32> to vector<8x288xf32>
    %136 = vector.extract_strided_slice %127 {offsets = [0, 38], sizes = [8, 288], strides = [1, 1]} : vector<8x342xf32> to vector<8x288xf32>
    %137 = tpu.concatenate %128, %129, %130, %131, %132, %133, %134, %135, %136 in 0 : vector<8x288xf32>, vector<8x288xf32>, vector<8x288xf32>, vector<8x288xf32>, vector<8x288xf32>, vector<8x288xf32>, vector<8x288xf32>, vector<8x288xf32>, vector<8x288xf32> -> vector<72x288xf32>
    %cst_63 = arith.constant dense<0.000000e+00> : vector<8x288xf32>
    %138 = tpu.matmul %6, %137, %cst_63 {dimension_numbers = #tpu.dot_dimension_numbers<[1], [0], [0], [1], [0, 0, 1, 1], [], []>} : vector<8x72xf32>, vector<72x288xf32>, vector<8x288xf32> -> vector<8x288xf32>
    %139 = arith.addf %5, %138 : vector<8x288xf32>
    %c0_64 = arith.constant 0 : index
    %c7_65 = arith.constant 7 : index
    %c0_66 = arith.constant 0 : index
    %c0_67 = arith.constant 0 : index
    %140 = vector.load %arg6[%c0_64, %c7_65, %c0_66, %c0_67] : memref<1x8x8x288xf32, #tpu.memory_space<vmem>>, vector<1x1x8x288xf32>
    %141 = vector.shape_cast %140 : vector<1x1x8x288xf32> to vector<8x288xf32>
    %142 = vector.shape_cast %139 : vector<8x288xf32> to vector<1x1x8x288xf32>
    tpu.vector_store %arg6[%c0_64, %c7_65, %c0_66, %c0_67], %142 {strides = array<i32>} : memref<1x8x8x288xf32, #tpu.memory_space<vmem>>, vector<1x1x8x288xf32>,
    %c0_68 = arith.constant 0 : index
    %c0_69 = arith.constant 0 : index
    %143 = vector.load %arg7[%c0_68, %c0_69] : memref<8x288xf32, #tpu.memory_space<vmem>>, vector<8x288xf32>
    %c0_70 = arith.constant 0 : index
    %c0_71 = arith.constant 0 : index
    %c0_72 = arith.constant 0 : index
    %c0_73 = arith.constant 0 : index
    %144 = vector.load %arg6[%c0_70, %c0_71, %c0_72, %c0_73] : memref<1x8x8x288xf32, #tpu.memory_space<vmem>>, vector<1x1x8x288xf32>
    %145 = vector.shape_cast %144 : vector<1x1x8x288xf32> to vector<8x288xf32>
    %146 = arith.addf %143, %145 : vector<8x288xf32>
    %cst_74 = arith.constant 1.000000e+00 : f32
    %147 = vector.broadcast %cst_74 : f32 to vector<8x288xf32>
    %148 = arith.mulf %146, %147 : vector<8x288xf32>
    %149 = math.floor %148 : vector<8x288xf32>
    %cst_75 = arith.constant 0.000000e+00 : f32
    %150 = vector.broadcast %cst_75 : f32 to vector<8x288xf32>
    %151 = arith.maximumf %149, %150 : vector<8x288xf32>
    %c0_76 = arith.constant 0 : index
    %c0_77 = arith.constant 0 : index
    %c0_78 = arith.constant 0 : index
    %c0_79 = arith.constant 0 : index
    %152 = vector.load %arg6[%c0_76, %c0_77, %c0_78, %c0_79] : memref<1x8x8x288xf32, #tpu.memory_space<vmem>>, vector<1x1x8x288xf32>
    %153 = vector.shape_cast %152 : vector<1x1x8x288xf32> to vector<8x288xf32>
    %154 = vector.shape_cast %151 : vector<8x288xf32> to vector<1x1x8x288xf32>
    tpu.vector_store %arg6[%c0_76, %c0_77, %c0_78, %c0_79], %154 {strides = array<i32>} : memref<1x8x8x288xf32, #tpu.memory_space<vmem>>, vector<1x1x8x288xf32>,
    %cst_80 = arith.constant 1.000000e+00 : f32
    %155 = vector.broadcast %cst_80 : f32 to vector<8x288xf32>
    %156 = arith.mulf %151, %155 : vector<8x288xf32>
    %157 = arith.subf %146, %156 : vector<8x288xf32>
    %c0_81 = arith.constant 0 : index
    %c1_82 = arith.constant 1 : index
    %c0_83 = arith.constant 0 : index
    %c0_84 = arith.constant 0 : index
    %158 = vector.load %arg6[%c0_81, %c1_82, %c0_83, %c0_84] : memref<1x8x8x288xf32, #tpu.memory_space<vmem>>, vector<1x1x8x288xf32>
    %159 = vector.shape_cast %158 : vector<1x1x8x288xf32> to vector<8x288xf32>
    %160 = arith.addf %157, %159 : vector<8x288xf32>
    %cst_85 = arith.constant 1.000000e+00 : f32
    %161 = vector.broadcast %cst_85 : f32 to vector<8x288xf32>
    %162 = arith.mulf %160, %161 : vector<8x288xf32>
    %163 = math.floor %162 : vector<8x288xf32>
    %cst_86 = arith.constant 0.000000e+00 : f32
    %164 = vector.broadcast %cst_86 : f32 to vector<8x288xf32>
    %165 = arith.maximumf %163, %164 : vector<8x288xf32>
    %c0_87 = arith.constant 0 : index
    %c1_88 = arith.constant 1 : index
    %c0_89 = arith.constant 0 : index
    %c0_90 = arith.constant 0 : index
    %166 = vector.load %arg6[%c0_87, %c1_88, %c0_89, %c0_90] : memref<1x8x8x288xf32, #tpu.memory_space<vmem>>, vector<1x1x8x288xf32>
    %167 = vector.shape_cast %166 : vector<1x1x8x288xf32> to vector<8x288xf32>
    %168 = vector.shape_cast %165 : vector<8x288xf32> to vector<1x1x8x288xf32>
    tpu.vector_store %arg6[%c0_87, %c1_88, %c0_89, %c0_90], %168 {strides = array<i32>} : memref<1x8x8x288xf32, #tpu.memory_space<vmem>>, vector<1x1x8x288xf32>,
    %cst_91 = arith.constant 1.000000e+00 : f32
    %169 = vector.broadcast %cst_91 : f32 to vector<8x288xf32>
    %170 = arith.mulf %165, %169 : vector<8x288xf32>
    %171 = arith.subf %160, %170 : vector<8x288xf32>
    %c0_92 = arith.constant 0 : index
    %c2_93 = arith.constant 2 : index
    %c0_94 = arith.constant 0 : index
    %c0_95 = arith.constant 0 : index
    %172 = vector.load %arg6[%c0_92, %c2_93, %c0_94, %c0_95] : memref<1x8x8x288xf32, #tpu.memory_space<vmem>>, vector<1x1x8x288xf32>
    %173 = vector.shape_cast %172 : vector<1x1x8x288xf32> to vector<8x288xf32>
    %174 = arith.addf %171, %173 : vector<8x288xf32>
    %cst_96 = arith.constant 1.000000e+00 : f32
    %175 = vector.broadcast %cst_96 : f32 to vector<8x288xf32>
    %176 = arith.mulf %174, %175 : vector<8x288xf32>
    %177 = math.floor %176 : vector<8x288xf32>
    %cst_97 = arith.constant 0.000000e+00 : f32
    %178 = vector.broadcast %cst_97 : f32 to vector<8x288xf32>
    %179 = arith.maximumf %177, %178 : vector<8x288xf32>
    %c0_98 = arith.constant 0 : index
    %c2_99 = arith.constant 2 : index
    %c0_100 = arith.constant 0 : index
    %c0_101 = arith.constant 0 : index
    %180 = vector.load %arg6[%c0_98, %c2_99, %c0_100, %c0_101] : memref<1x8x8x288xf32, #tpu.memory_space<vmem>>, vector<1x1x8x288xf32>
    %181 = vector.shape_cast %180 : vector<1x1x8x288xf32> to vector<8x288xf32>
    %182 = vector.shape_cast %179 : vector<8x288xf32> to vector<1x1x8x288xf32>
    tpu.vector_store %arg6[%c0_98, %c2_99, %c0_100, %c0_101], %182 {strides = array<i32>} : memref<1x8x8x288xf32, #tpu.memory_space<vmem>>, vector<1x1x8x288xf32>,
    %cst_102 = arith.constant 1.000000e+00 : f32
    %183 = vector.broadcast %cst_102 : f32 to vector<8x288xf32>
    %184 = arith.mulf %179, %183 : vector<8x288xf32>
    %185 = arith.subf %174, %184 : vector<8x288xf32>
    %c0_103 = arith.constant 0 : index
    %c3_104 = arith.constant 3 : index
    %c0_105 = arith.constant 0 : index
    %c0_106 = arith.constant 0 : index
    %186 = vector.load %arg6[%c0_103, %c3_104, %c0_105, %c0_106] : memref<1x8x8x288xf32, #tpu.memory_space<vmem>>, vector<1x1x8x288xf32>
    %187 = vector.shape_cast %186 : vector<1x1x8x288xf32> to vector<8x288xf32>
    %188 = arith.addf %185, %187 : vector<8x288xf32>
    %cst_107 = arith.constant 1.000000e+00 : f32
    %189 = vector.broadcast %cst_107 : f32 to vector<8x288xf32>
    %190 = arith.mulf %188, %189 : vector<8x288xf32>
    %191 = math.floor %190 : vector<8x288xf32>
    %cst_108 = arith.constant 0.000000e+00 : f32
    %192 = vector.broadcast %cst_108 : f32 to vector<8x288xf32>
    %193 = arith.maximumf %191, %192 : vector<8x288xf32>
    %c0_109 = arith.constant 0 : index
    %c3_110 = arith.constant 3 : index
    %c0_111 = arith.constant 0 : index
    %c0_112 = arith.constant 0 : index
    %194 = vector.load %arg6[%c0_109, %c3_110, %c0_111, %c0_112] : memref<1x8x8x288xf32, #tpu.memory_space<vmem>>, vector<1x1x8x288xf32>
    %195 = vector.shape_cast %194 : vector<1x1x8x288xf32> to vector<8x288xf32>
    %196 = vector.shape_cast %193 : vector<8x288xf32> to vector<1x1x8x288xf32>
    tpu.vector_store %arg6[%c0_109, %c3_110, %c0_111, %c0_112], %196 {strides = array<i32>} : memref<1x8x8x288xf32, #tpu.memory_space<vmem>>, vector<1x1x8x288xf32>,
    %cst_113 = arith.constant 1.000000e+00 : f32
    %197 = vector.broadcast %cst_113 : f32 to vector<8x288xf32>
    %198 = arith.mulf %193, %197 : vector<8x288xf32>
    %199 = arith.subf %188, %198 : vector<8x288xf32>
    %c0_114 = arith.constant 0 : index
    %c4_115 = arith.constant 4 : index
    %c0_116 = arith.constant 0 : index
    %c0_117 = arith.constant 0 : index
    %200 = vector.load %arg6[%c0_114, %c4_115, %c0_116, %c0_117] : memref<1x8x8x288xf32, #tpu.memory_space<vmem>>, vector<1x1x8x288xf32>
    %201 = vector.shape_cast %200 : vector<1x1x8x288xf32> to vector<8x288xf32>
    %202 = arith.addf %199, %201 : vector<8x288xf32>
    %cst_118 = arith.constant 1.000000e+00 : f32
    %203 = vector.broadcast %cst_118 : f32 to vector<8x288xf32>
    %204 = arith.mulf %202, %203 : vector<8x288xf32>
    %205 = math.floor %204 : vector<8x288xf32>
    %cst_119 = arith.constant 0.000000e+00 : f32
    %206 = vector.broadcast %cst_119 : f32 to vector<8x288xf32>
    %207 = arith.maximumf %205, %206 : vector<8x288xf32>
    %c0_120 = arith.constant 0 : index
    %c4_121 = arith.constant 4 : index
    %c0_122 = arith.constant 0 : index
    %c0_123 = arith.constant 0 : index
    %208 = vector.load %arg6[%c0_120, %c4_121, %c0_122, %c0_123] : memref<1x8x8x288xf32, #tpu.memory_space<vmem>>, vector<1x1x8x288xf32>
    %209 = vector.shape_cast %208 : vector<1x1x8x288xf32> to vector<8x288xf32>
    %210 = vector.shape_cast %207 : vector<8x288xf32> to vector<1x1x8x288xf32>
    tpu.vector_store %arg6[%c0_120, %c4_121, %c0_122, %c0_123], %210 {strides = array<i32>} : memref<1x8x8x288xf32, #tpu.memory_space<vmem>>, vector<1x1x8x288xf32>,
    %cst_124 = arith.constant 1.000000e+00 : f32
    %211 = vector.broadcast %cst_124 : f32 to vector<8x288xf32>
    %212 = arith.mulf %207, %211 : vector<8x288xf32>
    %213 = arith.subf %202, %212 : vector<8x288xf32>
    %c0_125 = arith.constant 0 : index
    %c5_126 = arith.constant 5 : index
    %c0_127 = arith.constant 0 : index
    %c0_128 = arith.constant 0 : index
    %214 = vector.load %arg6[%c0_125, %c5_126, %c0_127, %c0_128] : memref<1x8x8x288xf32, #tpu.memory_space<vmem>>, vector<1x1x8x288xf32>
    %215 = vector.shape_cast %214 : vector<1x1x8x288xf32> to vector<8x288xf32>
    %216 = arith.addf %213, %215 : vector<8x288xf32>
    %cst_129 = arith.constant 1.000000e+00 : f32
    %217 = vector.broadcast %cst_129 : f32 to vector<8x288xf32>
    %218 = arith.mulf %216, %217 : vector<8x288xf32>
    %219 = math.floor %218 : vector<8x288xf32>
    %cst_130 = arith.constant 0.000000e+00 : f32
    %220 = vector.broadcast %cst_130 : f32 to vector<8x288xf32>
    %221 = arith.maximumf %219, %220 : vector<8x288xf32>
    %c0_131 = arith.constant 0 : index
    %c5_132 = arith.constant 5 : index
    %c0_133 = arith.constant 0 : index
    %c0_134 = arith.constant 0 : index
    %222 = vector.load %arg6[%c0_131, %c5_132, %c0_133, %c0_134] : memref<1x8x8x288xf32, #tpu.memory_space<vmem>>, vector<1x1x8x288xf32>
    %223 = vector.shape_cast %222 : vector<1x1x8x288xf32> to vector<8x288xf32>
    %224 = vector.shape_cast %221 : vector<8x288xf32> to vector<1x1x8x288xf32>
    tpu.vector_store %arg6[%c0_131, %c5_132, %c0_133, %c0_134], %224 {strides = array<i32>} : memref<1x8x8x288xf32, #tpu.memory_space<vmem>>, vector<1x1x8x288xf32>,
    %cst_135 = arith.constant 1.000000e+00 : f32
    %225 = vector.broadcast %cst_135 : f32 to vector<8x288xf32>
    %226 = arith.mulf %221, %225 : vector<8x288xf32>
    %227 = arith.subf %216, %226 : vector<8x288xf32>
    %c0_136 = arith.constant 0 : index
    %c6_137 = arith.constant 6 : index
    %c0_138 = arith.constant 0 : index
    %c0_139 = arith.constant 0 : index
    %228 = vector.load %arg6[%c0_136, %c6_137, %c0_138, %c0_139] : memref<1x8x8x288xf32, #tpu.memory_space<vmem>>, vector<1x1x8x288xf32>
    %229 = vector.shape_cast %228 : vector<1x1x8x288xf32> to vector<8x288xf32>
    %230 = arith.addf %227, %229 : vector<8x288xf32>
    %cst_140 = arith.constant 1.000000e+00 : f32
    %231 = vector.broadcast %cst_140 : f32 to vector<8x288xf32>
    %232 = arith.mulf %230, %231 : vector<8x288xf32>
    %233 = math.floor %232 : vector<8x288xf32>
    %cst_141 = arith.constant 0.000000e+00 : f32
    %234 = vector.broadcast %cst_141 : f32 to vector<8x288xf32>
    %235 = arith.maximumf %233, %234 : vector<8x288xf32>
    %c0_142 = arith.constant 0 : index
    %c6_143 = arith.constant 6 : index
    %c0_144 = arith.constant 0 : index
    %c0_145 = arith.constant 0 : index
    %236 = vector.load %arg6[%c0_142, %c6_143, %c0_144, %c0_145] : memref<1x8x8x288xf32, #tpu.memory_space<vmem>>, vector<1x1x8x288xf32>
    %237 = vector.shape_cast %236 : vector<1x1x8x288xf32> to vector<8x288xf32>
    %238 = vector.shape_cast %235 : vector<8x288xf32> to vector<1x1x8x288xf32>
    tpu.vector_store %arg6[%c0_142, %c6_143, %c0_144, %c0_145], %238 {strides = array<i32>} : memref<1x8x8x288xf32, #tpu.memory_space<vmem>>, vector<1x1x8x288xf32>,
    %cst_146 = arith.constant 1.000000e+00 : f32
    %239 = vector.broadcast %cst_146 : f32 to vector<8x288xf32>
    %240 = arith.mulf %235, %239 : vector<8x288xf32>
    %241 = arith.subf %230, %240 : vector<8x288xf32>
    %c0_147 = arith.constant 0 : index
    %c7_148 = arith.constant 7 : index
    %c0_149 = arith.constant 0 : index
    %c0_150 = arith.constant 0 : index
    %242 = vector.load %arg6[%c0_147, %c7_148, %c0_149, %c0_150] : memref<1x8x8x288xf32, #tpu.memory_space<vmem>>, vector<1x1x8x288xf32>
    %243 = vector.shape_cast %242 : vector<1x1x8x288xf32> to vector<8x288xf32>
    %244 = arith.addf %241, %243 : vector<8x288xf32>
    %cst_151 = arith.constant 1.000000e+00 : f32
    %245 = vector.broadcast %cst_151 : f32 to vector<8x288xf32>
    %246 = arith.mulf %244, %245 : vector<8x288xf32>
    %247 = math.floor %246 : vector<8x288xf32>
    %cst_152 = arith.constant 0.000000e+00 : f32
    %248 = vector.broadcast %cst_152 : f32 to vector<8x288xf32>
    %249 = arith.maximumf %247, %248 : vector<8x288xf32>
    %c0_153 = arith.constant 0 : index
    %c7_154 = arith.constant 7 : index
    %c0_155 = arith.constant 0 : index
    %c0_156 = arith.constant 0 : index
    %250 = vector.load %arg6[%c0_153, %c7_154, %c0_155, %c0_156] : memref<1x8x8x288xf32, #tpu.memory_space<vmem>>, vector<1x1x8x288xf32>
    %251 = vector.shape_cast %250 : vector<1x1x8x288xf32> to vector<8x288xf32>
    %252 = vector.shape_cast %249 : vector<8x288xf32> to vector<1x1x8x288xf32>
    tpu.vector_store %arg6[%c0_153, %c7_154, %c0_155, %c0_156], %252 {strides = array<i32>} : memref<1x8x8x288xf32, #tpu.memory_space<vmem>>, vector<1x1x8x288xf32>,
    %cst_157 = arith.constant 1.000000e+00 : f32
    %253 = vector.broadcast %cst_157 : f32 to vector<8x288xf32>
    %254 = arith.mulf %249, %253 : vector<8x288xf32>
    %255 = arith.subf %244, %254 : vector<8x288xf32>
    %c0_158 = arith.constant 0 : index
    %c0_159 = arith.constant 0 : index
    %256 = vector.load %arg7[%c0_158, %c0_159] : memref<8x288xf32, #tpu.memory_space<vmem>>, vector<8x288xf32>
    tpu.vector_store %arg7[%c0_158, %c0_159], %255 {strides = array<i32>} : memref<8x288xf32, #tpu.memory_space<vmem>>, vector<8x288xf32>,
    return
  }
  func.func @transform_0(%arg0: i32, %arg1: i32, %arg2: i32) -> (i32, i32, i32, i32) {
    %c0_i32 = arith.constant 0 : i32
    %c0_i32_0 = arith.constant 0 : i32
    %c0_i32_1 = arith.constant 0 : i32
    return %arg0, %arg2, %c0_i32, %c0_i32_0 : i32, i32, i32, i32
  }
  func.func @transform_1(%arg0: i32, %arg1: i32, %arg2: i32) -> (i32, i32) {
    %c0_i32 = arith.constant 0 : i32
    %c0_i32_0 = arith.constant 0 : i32
    return %arg1, %c0_i32 : i32, i32
  }
  func.func @transform_2(%arg0: i32, %arg1: i32, %arg2: i32) -> (i32, i32) {
    %c0_i32 = arith.constant 0 : i32
    %c0_i32_0 = arith.constant 0 : i32
    return %arg1, %c0_i32 : i32, i32
  }
  func.func @transform_3(%arg0: i32, %arg1: i32, %arg2: i32) -> (i32, i32, i32, i32) {
    %c0_i32 = arith.constant 0 : i32
    %c0_i32_0 = arith.constant 0 : i32
    return %arg0, %arg2, %arg1, %c0_i32 : i32, i32, i32, i32
  }
}

</mosaic_0001>

<bundles_post_ra>
// kernel: network_forward.1
= control target key start
LH: loop header
LB: loop body
LE: loop exit
PB: predicated region body
PF: predicated region fallthrough
CT: control target
= control target key end

     0   :  { %s3617_s12 = smov 0   ;;  %s3619_s13 = smov 0   ;;  %s4364_s0 = inlined_call_operand.vmem [shape: f32[2,8,8,342], index: 0, kind: input, shape index: {}]   ;;  %s4365_s1 = inlined_call_operand.vmem [shape: f32[8,72], index: 1, kind: input, shape index: {}]   ;;  %s4366_s2 = inlined_call_operand.vmem [shape: f32[8,1], index: 2, kind: input, shape index: {}]   ;;  %s4367_s3 = inlined_call_operand.vmem [shape: f32[2,8,8,288], index: 3, kind: output, shape index: {}]  }
   0x1   :  { %s3621_s14 = smov 0  }
   0x2 LB: > { %s32_s15 = sadd.s32 1, %s3579_s13  ;;  %p2537_p0 = scmp.ge.s32.totalorder %s3583_s14, 1  ;;  %s3583_s14 = sphi %s3621_s14, %s13_s14   ;;  %s3579_s13 = sphi %s3619_s13, %s4369_s13   ;;  %s3575_s12 = sphi %s3617_s12, %s4368_s12  }
   0x3   : > { %p34_p1 = scmp.ge.s32.totalorder %s32_s15, 2  ;;  %p186_p2 = scmp.lt.s32.totalorder %s3583_s14, 3 }
   0x5   : > { %s4371_s15 = smov (%p34_p1, %s32_s15), 0  ;;  %p187_p3 = pnand %p2537_p0, %p186_p2 }
   0x6   : > { %p233_p4 = scmp.lt.s32.totalorder (!%p187_p3), %s3575_s12, 1  ;;  %v3585_v0 = vmov (!%p187_p3), 0.0|0.0   ;;  %s3586_s20 = smov (!%p187_p3), 126   ;;  %v3591_v7 = vmov (!%p187_p3), 0.0   ;;  %vm3594_vm0 = vmmov (!%p187_p3), 0   ;;  %vm293_vm1 = vcmask (!%p187_p3), 1039360  }
   0x7   : > { %190 = sbr.rel (%p187_p3) target bundleno = 585 (0x249), region = 32  ;;  %2906 = vmatprep.subr.bf16.mxu1 (!%p187_p3), %v3585_v0  ;;  %s3587_s21 = smov (!%p187_p3), 127   ;;  %451 = vmatprep.mubr.f32.mxu0 (!%p187_p3), %v3591_v7  ;;  %vm305_vm2 = vcmask (!%p187_p3), 1031168   ;;  %vm317_vm3 = vcmask (!%p187_p3), 900096   ;;  %vm329_vm4 = vcmask (!%p187_p3), 891904   ;;  %vm341_vm5 = vcmask (!%p187_p3), 883712  }
   0x8   : > { %s3588_s22 = smov (!%p187_p3), 110   ;;  %s3589_s23 = smov (!%p187_p3), 108   ;;  %2740 = vmatprep.mubr.msk.f32.mxu1 (!%p187_p3), %vm3594_vm0, %v3591_v7  ;;  %vm353_vm6 = vcmask (!%p187_p3), 752640   ;;  %vm365_vm7 = vcmask (!%p187_p3), 744448   ;;  %vm377_vm8 = vcmask (!%p187_p3), 736256   ;;  %vm383_vm9 = vcmask (!%p187_p3), 588800  }
   0x9   : > { %s3590_s24 = smov (!%p187_p3), 109   ;;  %s3592_s25 = smov (!%p187_p3), 91   ;;  %vm272_vm10 = vcmask (!%p187_p3), 261120  }
   0xa   : > { %s3593_s26 = smov (!%p187_p3), 92   ;;  %s3595_s27 = smov (!%p187_p3), 90   ;;  %273 = vst.msk [vmem:[#allocation2 + $0x10] sm:$0xff] (!%p187_p3), %vm272_vm10, %v3591_v7 }
   0xe   : > { %s4373_s12 = smov (!%p233_p4, %s3575_s12), 1 }
   0xf   : > { %s3114_s16 = smul.u32 192, %s4373_s12 }
  0x11   : > { %s3644_s19 = scalar_lea.vmem %s4364_s0, %s3114_s16  ;;  %s4272_s9 = scalar_lea.vmem %s4367_s3, %s3114_s16 }
  0x12   : > { %v3647_v1 = vld [vmem:[%s3644_s19 + $0x8] sm:$0xff]  ;;  %v3650_v2 = vld [vmem:[%s3644_s19 + $0x10] sm:$0xff]  ;;  %v3653_v3 = vld [vmem:[%s3644_s19] sm:$0xff] }
  0x13   : > { %v3161_v4 = vpack.i.bf16 %v3650_v2, %v3647_v1  ;;  %v3658_v5 = vld [vmem:[%s3644_s19 + $0x20] sm:$0xff]  ;;  %v3680_v8 = vld [vmem:[%s3644_s19 + $0x18] sm:$0xff]  ;;  %v3683_v9 = vld [vmem:[%s3644_s19 + $0x28] sm:$0xff] }
  0x14   : > { %v3156_v6 = vpack.i.bf16 %v3658_v5, %v3653_v3  ;;  %v3221_v10 = vpack.i.bf16 %v3680_v8, %v3683_v9  ;;  %v3701_v11 = vld [vmem:[%s3644_s19 + $0x38] sm:$0xff]  ;;  %v3704_v12 = vld [vmem:[%s3644_s19 + $0x40] sm:$0xff]  ;;  %v3713_v14 = vld [vmem:[%s3644_s19 + $0x30] sm:$0xff] }
  0x15   : > { %3162 = vrot.lane.b32.xlu1 %v3161_v4, %s3586_s20  ;;  %3152 = vrot.lane.b32.xlu0 %v3161_v4, %s3587_s21  ;;  %v3256_v13 = vpack.i.bf16 %v3704_v12, %v3701_v11  ;;  %v3716_v15 = vld [vmem:[%s3644_s19 + $0x50] sm:$0xff]  ;;  %v3736_v17 = vld [vmem:[%s3644_s19 + $0x48] sm:$0xff] }
  0x16   : > { %v3261_v16 = vpack.i.bf16 %v3716_v15, %v3713_v14  ;;  %v3739_v18 = vld [vmem:[%s3644_s19 + $0x58] sm:$0xff]  ;;  %v3757_v20 = vld [vmem:[%s3644_s19 + $0x68] sm:$0xff]  ;;  %v3760_v21 = vld [vmem:[%s3644_s19 + $0x70] sm:$0xff] }
  0x17   : > { %v3326_v19 = vpack.i.bf16 %v3736_v17, %v3739_v18  ;;  %v3361_v22 = vpack.i.bf16 %v3760_v21, %v3757_v20  ;;  %v3768_v23 = vld [vmem:[%s3644_s19 + $0x60] sm:$0xff] }
  0x18   : > { %v3771_v24 = vld [vmem:[%s3644_s19 + $0x80] sm:$0xff] }
  0x19   : > { %3167 = vrot.lane.b32.xlu1 %v3161_v4, %s3588_s22  ;;  %3157 = vrot.lane.b32.xlu0 %v3156_v6, %s3587_s21  ;;  %v3778_v25 = vpack.i.bf16 %v3771_v24, %v3768_v23 }
  0x1d   : > { %3177 = vrot.lane.b32.xlu1 %v3156_v6, %s3588_s22  ;;  %3172 = vrot.lane.b32.xlu0 %v3156_v6, %s3586_s20 }
  0x21   : > { %3187 = vrot.lane.b32.xlu1 %v3161_v4, %s3589_s23  ;;  %3182 = vrot.lane.b32.xlu0 %v3161_v4, %s3590_s24 }
  0x25   : > { %3197 = vrot.lane.b32.xlu1 %v3156_v6, %s3589_s23  ;;  %3192 = vrot.lane.b32.xlu0 %v3156_v6, %s3590_s24 }
  0x29   : > { %3207 = vrot.lane.b32.xlu1 %v3161_v4, %s3592_s25  ;;  %3202 = vrot.lane.b32.xlu0 %v3161_v4, %s3593_s26 }
  0x2d   : > { %3217 = vrot.lane.b32.xlu1 %v3156_v6, %s3592_s25  ;;  %3212 = vrot.lane.b32.xlu0 %v3156_v6, %s3593_s26 }
  0x31   : > { %375 = vrot.lane.b32.xlu1 %v3650_v2, %s3595_s27  ;;  %373 = vrot.lane.b32.xlu0 %v3647_v1, %s3595_s27 }
  0x35   : > { %371 = vrot.lane.b32.xlu1 %v3653_v3, %s3595_s27  ;;  %3222 = vrot.lane.b32.xlu0 %v3221_v10, %s3587_s21 }
  0x39   : > { %3232 = vrot.lane.b32.xlu1 %v3221_v10, %s3588_s22  ;;  %3227 = vrot.lane.b32.xlu0 %v3221_v10, %s3586_s20 }
  0x3d   : > { %3242 = vrot.lane.b32.xlu1 %v3221_v10, %s3589_s23  ;;  %3237 = vrot.lane.b32.xlu0 %v3221_v10, %s3590_s24 }
  0x41   : > { %3252 = vrot.lane.b32.xlu1 %v3221_v10, %s3592_s25  ;;  %3247 = vrot.lane.b32.xlu0 %v3221_v10, %s3593_s26 }
  0x45   : > { %623 = vrot.lane.b32.xlu1 %v3683_v9, %s3595_s27  ;;  %621 = vrot.lane.b32.xlu0 %v3658_v5, %s3595_s27 }
  0x49   : > { %619 = vrot.lane.b32.xlu1 %v3680_v8, %s3595_s27  ;;  %3257 = vrot.lane.b32.xlu0 %v3256_v13, %s3587_s21 }
  0x4d   : > { %3267 = vrot.lane.b32.xlu1 %v3256_v13, %s3586_s20  ;;  %3262 = vrot.lane.b32.xlu0 %v3261_v16, %s3587_s21 }
  0x51   : > { %3277 = vrot.lane.b32.xlu1 %v3261_v16, %s3586_s20  ;;  %3272 = vrot.lane.b32.xlu0 %v3256_v13, %s3588_s22 }
  0x55   : > { %3287 = vrot.lane.b32.xlu1 %v3256_v13, %s3590_s24  ;;  %3282 = vrot.lane.b32.xlu0 %v3261_v16, %s3588_s22 }
  0x59   : > { %3297 = vrot.lane.b32.xlu1 %v3261_v16, %s3590_s24  ;;  %3292 = vrot.lane.b32.xlu0 %v3256_v13, %s3589_s23 }
  0x5d   : > { %3307 = vrot.lane.b32.xlu1 %v3256_v13, %s3593_s26  ;;  %3302 = vrot.lane.b32.xlu0 %v3261_v16, %s3589_s23 }
  0x61   : > { %3317 = vrot.lane.b32.xlu1 %v3261_v16, %s3593_s26  ;;  %3312 = vrot.lane.b32.xlu0 %v3256_v13, %s3592_s25 }
  0x65   : > { %864 = vrot.lane.b32.xlu1 %v3701_v11, %s3595_s27  ;;  %3322 = vrot.lane.b32.xlu0 %v3261_v16, %s3592_s25 }
  0x69   : > { %3327 = vrot.lane.b32.xlu1 %v3326_v19, %s3587_s21  ;;  %866 = vrot.lane.b32.xlu0 %v3704_v12, %s3595_s27 }
  0x6d   : > { %3332 = vrot.lane.b32.xlu1 %v3326_v19, %s3586_s20  ;;  %862 = vrot.lane.b32.xlu0 %v3713_v14, %s3595_s27 }
  0x71   : > { %3342 = vrot.lane.b32.xlu1 %v3326_v19, %s3590_s24  ;;  %3337 = vrot.lane.b32.xlu0 %v3326_v19, %s3588_s22 }
  0x75   : > { %3352 = vrot.lane.b32.xlu1 %v3326_v19, %s3593_s26  ;;  %3347 = vrot.lane.b32.xlu0 %v3326_v19, %s3589_s23 }
  0x79   : > { %1107 = vrot.lane.b32.xlu1 %v3716_v15, %s3595_s27  ;;  %3357 = vrot.lane.b32.xlu0 %v3326_v19, %s3592_s25  ;;  %v3834_v19 = vld [vmem:[%s3644_s19 + $0x78] sm:$0xff] }
  0x7d   : > { %3362 = vrot.lane.b32.xlu1 %v3361_v22, %s3587_s21  ;;  %1109 = vrot.lane.b32.xlu0 %v3739_v18, %s3595_s27 }
  0x81   : > { %3367 = vrot.lane.b32.xlu1 %v3778_v25, %s3587_s21  ;;  %1105 = vrot.lane.b32.xlu0 %v3736_v17, %s3595_s27 }
  0x85   : > { %3377 = vrot.lane.b32.xlu1 %v3361_v22, %s3588_s22  ;;  %3372 = vrot.lane.b32.xlu0 %v3361_v22, %s3586_s20 }
  0x87   : > { %v3163_v26 = vpop.permute.xlu1 %3162  ;;  %v3153_v27 = vpop.permute.xlu0 %3152 }
  0x88   : > { %v3154_v28 = vunpack.i.l.bf16 %v3153_v27  ;;  %v3155_v29 = vunpack.i.h.bf16 %v3153_v27  ;;  %v3165_v30 = vunpack.i.h.bf16 %v3163_v26  ;;  %v3164_v31 = vunpack.i.l.bf16 %v3163_v26 }
  0x89   : > { %3387 = vrot.lane.b32.xlu1 %v3778_v25, %s3588_s22  ;;  %3382 = vrot.lane.b32.xlu0 %v3778_v25, %s3586_s20 }
  0x8a   : > { %v2907_v32 = vpack.c.bf16 %v3155_v29, %v3650_v2  ;;  %v295_v33 = vsel %vm293_vm1, %v3154_v28, %v3155_v29  ;;  %v307_v40 = vsel %vm305_vm2, %v3164_v31, %v3165_v30 }
  0x8b   : > { %v3168_v34 = vpop.permute.xlu1 %3167  ;;  %v3792_v35 = vpop.permute.xlu0 %3157  ;;  %v2890_v36 = vpack.c.bf16 %v295_v33, %v3647_v1 }
  0x8c   : > { %v3170_v37 = vunpack.i.h.bf16 %v3168_v34  ;;  %v3169_v38 = vunpack.i.l.bf16 %v3168_v34  ;;  %v3159_v39 = vunpack.i.l.bf16 %v3792_v35  ;;  %2908 = vmatpush3.bf16.msra.mxu1 %v2907_v32 }
  0x8d   : > { %2891 = vmatprep.subr.bf16.mxu0 %v2890_v36  ;;  %3397 = vrot.lane.b32.xlu1 %v3361_v22, %s3589_s23 }
  0x8e   : > { %3392 = vrot.lane.b32.xlu0 %v3361_v22, %s3590_s24  ;;  %2909 = vmatprep.subr.bf16.mxu1 %v3585_v0  ;;  %v2910_v41 = vpack.c.bf16 %v3170_v37, %v3165_v30  ;;  %v294_v42 = vsel %vm293_vm1, %v3159_v39, %v3154_v28  ;;  %v319_v43 = vsel %vm317_vm3, %v3169_v38, %v3170_v37 }
  0x8f   : > { %v3802_v44 = vpop.permute.xlu1 %3177  ;;  %v3804_v45 = vpop.permute.xlu0 %3172  ;;  %v2892_v46 = vpack.c.bf16 %v294_v42, %v3653_v3  ;;  %v2894_v47 = vpack.c.bf16 %v319_v43, %v307_v40 }
  0x90   : > { %v3179_v48 = vunpack.i.l.bf16 %v3802_v44  ;;  %v3174_v49 = vunpack.i.l.bf16 %v3804_v45  ;;  %2911 = vmatpush3.bf16.msra.mxu1 %v2910_v41 }
  0x91   : > { %3407 = vrot.lane.b32.xlu1 %v3778_v25, %s3589_s23  ;;  %2893 = vmatpush1.bf16.msra.mxu0 %v2892_v46 }
  0x92   : > { %3402 = vrot.lane.b32.xlu0 %v3778_v25, %s3590_s24  ;;  %2895 = vmatprep.subr.bf16.mxu0 %v2894_v47  ;;  %v306_v50 = vsel %vm305_vm2, %v3174_v49, %v3164_v31  ;;  %v318_v51 = vsel %vm317_vm3, %v3179_v48, %v3169_v38  ;;  %v3863_v47 = vld [vmem:[%s4365_s1] sm:$0xff] }
  0x93   : > { %v3188_v52 = vpop.permute.xlu1 %3187  ;;  %v3183_v53 = vpop.permute.xlu0 %3182  ;;  %v2896_v54 = vpack.c.bf16 %v318_v51, %v306_v50  ;;  %2912 = vmatprep.subr.bf16.mxu1 %v3585_v0  ;;  %v3160_v50 = vunpack.i.h.bf16 %v3792_v35  ;;  %v3180_v35 = vunpack.i.h.bf16 %v3802_v44 }
  0x94   : > { %v3190_v55 = vunpack.i.h.bf16 %v3188_v52  ;;  %v3189_v56 = vunpack.i.l.bf16 %v3188_v52  ;;  %v3185_v57 = vunpack.i.h.bf16 %v3183_v53  ;;  %v3184_v58 = vunpack.i.l.bf16 %v3183_v53 }
  0x95   : > { %3417 = vrot.lane.b32.xlu1 %v3361_v22, %s3592_s25  ;;  %2897 = vmatpush1.bf16.msra.mxu0 %v2896_v54 }
  0x96   : > { %3412 = vrot.lane.b32.xlu0 %v3361_v22, %s3593_s26  ;;  %v2913_v59 = vpack.c.bf16 %v3190_v55, %v3185_v57  ;;  %v331_v60 = vsel %vm329_vm4, %v3184_v58, %v3185_v57  ;;  %v343_v61 = vsel %vm341_vm5, %v3189_v56, %v3190_v55  ;;  %v3837_v22 = vld [vmem:[%s3644_s19 + $0x88] sm:$0xff]  ;;  %v3175_v57 = vunpack.i.h.bf16 %v3804_v45 }
  0x97   : > { %v3820_v62 = vpop.permute.xlu1 %3197  ;;  %v3822_v63 = vpop.permute.xlu0 %3192  ;;  %v2898_v1 = vpack.c.bf16 %v343_v61, %v331_v60  ;;  %v3431_v30 = vpack.i.bf16 %v3834_v19, %v3837_v22 }
  0x98   : > { %v3199_v2 = vunpack.i.l.bf16 %v3820_v62  ;;  %v3194_v3 = vunpack.i.l.bf16 %v3822_v63  ;;  %2914 = vmatpush3.bf16.msra.mxu1 %v2913_v59  ;;  %v3200_v44 = vunpack.i.h.bf16 %v3820_v62 }
  0x99   : > { %3427 = vrot.lane.b32.xlu1 %v3778_v25, %s3592_s25  ;;  %2899 = vmatprep.subr.bf16.mxu0 %v2898_v1 }
  0x9a   : > { %3422 = vrot.lane.b32.xlu0 %v3778_v25, %s3593_s26  ;;  %v330_v4 = vsel %vm329_vm4, %v3194_v3, %v3184_v58  ;;  %v342_v6 = vsel %vm341_vm5, %v3199_v2, %v3189_v56  ;;  %2915 = vmatprep.subr.bf16.mxu1 %v3585_v0 }
  0x9b   : > { %v3208_v10 = vpop.permute.xlu1 %3207  ;;  %v3203_v13 = vpop.permute.xlu0 %3202  ;;  %v2900_v16 = vpack.c.bf16 %v342_v6, %v330_v4  ;;  %v3895_v6 = vld [vmem:[%s3644_s19 + $0xa0] sm:$0xff] }
  0x9c   : > { %v3210_v26 = vunpack.i.h.bf16 %v3208_v10  ;;  %v3209_v27 = vunpack.i.l.bf16 %v3208_v10  ;;  %v3205_v28 = vunpack.i.h.bf16 %v3203_v13  ;;  %v3204_v29 = vunpack.i.l.bf16 %v3203_v13 }
  0x9d   : > { %1352 = vrot.lane.b32.xlu1 %v3760_v21, %s3595_s27  ;;  %2901 = vmatpush1.bf16.msra.mxu0 %v2900_v16  ;;  %v3195_v10 = vunpack.i.h.bf16 %v3822_v63 }
  0x9e   : > { %1350 = vrot.lane.b32.xlu0 %v3757_v20, %s3595_s27  ;;  %v2916_v25 = vpack.c.bf16 %v3210_v26, %v3205_v28  ;;  %v355_v31 = vsel %vm353_vm6, %v3204_v29, %v3205_v28  ;;  %v367_v32 = vsel %vm365_vm7, %v3209_v27, %v3210_v26  ;;  %v3596_v28 = vmov 0  }
  0x9f   : > { %v3847_v33 = vpop.permute.xlu1 %3217  ;;  %v3849_v34 = vpop.permute.xlu0 %3212  ;;  %v2902_v36 = vpack.c.bf16 %v367_v32, %v355_v31  ;;  %3556 = vset.pattern.permute.xlu1 %v3596_v28  ;;  %3557 = vset.pattern.permute.xlu0 %v3596_v28 }
  0xa0   : > { %v3219_v37 = vunpack.i.l.bf16 %v3847_v33  ;;  %v3214_v38 = vunpack.i.l.bf16 %v3849_v34  ;;  %2917 = vmatpush3.bf16.msra.mxu1 %v2916_v25 }
  0xa1   : > { %1348 = vrot.lane.b32.xlu1 %v3768_v23, %s3595_s27  ;;  %2903 = vmatprep.subr.bf16.mxu0 %v2902_v36 }
  0xa2   : > { %3432 = vrot.lane.b32.xlu0 %v3431_v30, %s3587_s21  ;;  %v354_v39 = vsel %vm353_vm6, %v3214_v38, %v3204_v29  ;;  %v366_v40 = vsel %vm365_vm7, %v3219_v37, %v3209_v27  ;;  %2738 = vmatprep.subr.mxu1 %v3591_v7 }
  0xa3   : > { %v376_v41 = vpop.permute.xlu1 %375  ;;  %v374_v42 = vpop.permute.xlu0 %373  ;;  %v2904_v43 = vpack.c.bf16 %v366_v40, %v354_v39  ;;  %v3914_v40 = vld [vmem:[%s3644_s19 + $0x90] sm:$0xff] }
  0xa4   : > { %v379_v46 = vsel %vm377_vm8, %v374_v42, %v376_v41  ;;  %2739 = vmatpush3.msra.mxu1 %v376_v41  ;;  %v3917_v41 = vld [vmem:[%s3644_s19 + $0xb0] sm:$0xff] }
  0xa5   : > { %3442 = vrot.lane.b32.xlu1 %v3431_v30, %s3588_s22  ;;  %2905 = vmatpush1.bf16.msra.mxu0 %v2904_v43  ;;  %v3215_v43 = vunpack.i.h.bf16 %v3849_v34 }
  0xa6   : > { %3437 = vrot.lane.b32.xlu0 %v3431_v30, %s3586_s20  ;;  %403 = vmatprep.subr.mxu0 %v379_v46 }
  0xa7   : > { %v372_v48 = vpop.permute.xlu1 %371  ;;  %v3223_v49 = vpop.permute.xlu0 %3222  ;;  %2934 = vmatprep.subr.bf16.mxu1 %v3585_v0  ;;  %2741 = vmatmul.mubr.msk.f32.vlgmr.msra.gmra.mrb[0].mxu1 %vm383_vm9, %v3863_v47 }
  0xa8   : > { %v3225_v51 = vunpack.i.h.bf16 %v3223_v49  ;;  %v3224_v52 = vunpack.i.l.bf16 %v3223_v49  ;;  %v378_v53 = vsel %vm377_vm8, %v372_v48, %v374_v42  ;;  %2761 = vmatprep.mubr.msk.f32.mxu1 %vm3594_vm0, %v3591_v7  ;;  %v3220_v42 = vunpack.i.h.bf16 %v3847_v33 }
  0xa9   : > { %3452 = vrot.lane.b32.xlu1 %v3431_v30, %s3589_s23  ;;  %404 = vmatpush1.msra.mxu0 %v378_v53  ;;  %v3471_v33 = vpack.i.bf16 %v3917_v41, %v3914_v40 }
  0xaa   : > { %v548_v54 = vsel %vm293_vm1, %v3225_v51, %v3160_v50  ;;  %v2935_v55 = vpack.c.bf16 %v3224_v52, %v3683_v9  ;;  %3447 = vrot.lane.b32.xlu0 %v3431_v30, %s3590_s24  ;;  %v549_v56 = vsel %vm293_vm1, %v3160_v50, %v3224_v52  ;;  %2540 = vmatmul.mubr.msk.f32.vlgmr.msra.gmra.mrb[0].mxu0 %vm383_vm9, %v3863_v47 }
  0xab   : > { %v2920_v58 = vpack.c.bf16 %v548_v54, %v3680_v8  ;;  %v3233_v59 = vpop.permute.xlu1 %3232  ;;  %v3228_v60 = vpop.permute.xlu0 %3227  ;;  %v2918_v61 = vpack.c.bf16 %v549_v56, %v3658_v5  ;;  %694 = vmatprep.mubr.f32.mxu0 %v3591_v7  ;;  %v3892_v5 = vld [vmem:[%s3644_s19 + $0x98] sm:$0xff] }
  0xac   : > { %v3235_v9 = vunpack.i.h.bf16 %v3233_v59  ;;  %v3234_v1 = vunpack.i.l.bf16 %v3233_v59  ;;  %v3230_v2 = vunpack.i.h.bf16 %v3228_v60  ;;  %v3229_v3 = vunpack.i.l.bf16 %v3228_v60  ;;  %2936 = vmatpush3.bf16.msra.mxu1 %v2935_v55 }
  0xad   : > { %3462 = vrot.lane.b32.xlu1 %v3431_v30, %s3592_s25  ;;  %2919 = vmatprep.subr.bf16.mxu0 %v2918_v61  ;;  %v3906_v32 = vpack.i.bf16 %v3895_v6, %v3892_v5 }
  0xae   : > { %v570_v8 = vsel %vm317_vm3, %v3235_v9, %v3180_v35  ;;  %v559_v45 = vsel %vm305_vm2, %v3230_v2, %v3175_v57  ;;  %v2938_v4 = vpack.c.bf16 %v3234_v1, %v3229_v3  ;;  %3457 = vrot.lane.b32.xlu0 %v3431_v30, %s3593_s26  ;;  %2921 = vmatpush1.bf16.msra.mxu0 %v2920_v58 }
  0xaf   : > { %v2924_v13 = vpack.c.bf16 %v570_v8, %v559_v45  ;;  %v3243_v16 = vpop.permute.xlu1 %3242  ;;  %v3238_v26 = vpop.permute.xlu0 %3237  ;;  %2937 = vmatprep.subr.bf16.mxu1 %v3585_v0  ;;  %v560_v62 = vsel %vm305_vm2, %v3175_v57, %v3229_v3  ;;  %v571_v27 = vsel %vm317_vm3, %v3180_v35, %v3234_v1 }
  0xb0   : > { %v3245_v29 = vunpack.i.h.bf16 %v3243_v16  ;;  %v3244_v25 = vunpack.i.l.bf16 %v3243_v16  ;;  %v3240_v30 = vunpack.i.h.bf16 %v3238_v26  ;;  %v3239_v31 = vunpack.i.l.bf16 %v3238_v26  ;;  %2939 = vmatpush3.bf16.msra.mxu1 %v2938_v4 }
  0xb1   : > { %1595 = vrot.lane.b32.xlu1 %v3837_v22, %s3595_s27  ;;  %v2922_v63 = vpack.c.bf16 %v571_v27, %v560_v62  ;;  %2940 = vmatprep.subr.bf16.mxu1 %v3585_v0 }
  0xb2   : > { %v592_v36 = vsel %vm341_vm5, %v3245_v29, %v3200_v44  ;;  %v581_v37 = vsel %vm329_vm4, %v3240_v30, %v3195_v10  ;;  %v2941_v38 = vpack.c.bf16 %v3244_v25, %v3239_v31  ;;  %1593 = vrot.lane.b32.xlu0 %v3771_v24, %s3595_s27  ;;  %v582_v39 = vsel %vm329_vm4, %v3195_v10, %v3239_v31 }
  0xb3   : > { %v2928_v46 = vpack.c.bf16 %v592_v36, %v581_v37  ;;  %2923 = vmatprep.subr.bf16.mxu0 %v2922_v63  ;;  %v3253_v48 = vpop.permute.xlu1 %3252  ;;  %v3248_v49 = vpop.permute.xlu0 %3247  ;;  %v593_v50 = vsel %vm341_vm5, %v3200_v44, %v3244_v25 }
  0xb4   : > { %2925 = vmatpush1.bf16.msra.mxu0 %v2924_v13  ;;  %v3255_v51 = vunpack.i.h.bf16 %v3253_v48  ;;  %v3254_v52 = vunpack.i.l.bf16 %v3253_v48  ;;  %v3250_v24 = vunpack.i.h.bf16 %v3248_v49  ;;  %v3249_v53 = vunpack.i.l.bf16 %v3248_v49  ;;  %2942 = vmatpush3.bf16.msra.mxu1 %v2941_v38 }
  0xb5   : > { %1591 = vrot.lane.b32.xlu1 %v3834_v19, %s3595_s27  ;;  %v2926_v54 = vpack.c.bf16 %v593_v50, %v582_v39  ;;  %2943 = vmatprep.subr.bf16.mxu1 %v3585_v0 }
  0xb6   : > { %v614_v34 = vsel %vm365_vm7, %v3255_v51, %v3220_v42  ;;  %v603_v55 = vsel %vm353_vm6, %v3250_v24, %v3215_v43  ;;  %v2944_v56 = vpack.c.bf16 %v3254_v52, %v3249_v53  ;;  %3467 = vrot.lane.b32.xlu0 %v3906_v32, %s3587_s21  ;;  %v604_v35 = vsel %vm353_vm6, %v3215_v43, %v3249_v53 }
  0xb7   : > { %2927 = vmatprep.subr.bf16.mxu0 %v2926_v54  ;;  %v624_v57 = vpop.permute.xlu1 %623  ;;  %v622_v58 = vpop.permute.xlu0 %621  ;;  %v615_v59 = vsel %vm365_vm7, %v3220_v42, %v3254_v52  ;;  %v2932_v60 = vpack.c.bf16 %v614_v34, %v603_v55 }
  0xb8   : > { %2929 = vmatpush1.bf16.msra.mxu0 %v2928_v46  ;;  %2945 = vmatpush3.bf16.msra.mxu1 %v2944_v56  ;;  %v2930_v61 = vpack.c.bf16 %v615_v59, %v604_v35  ;;  %v626_v44 = vsel %vm377_vm8, %v622_v58, %v624_v57  ;;  %v3990_v56 = vld [vmem:[%s3644_s19 + $0xa8] sm:$0xff]  ;;  %v3993_v35 = vld [vmem:[%s3644_s19 + $0xb8] sm:$0xff] }
  0xb9   : > { %3477 = vrot.lane.b32.xlu1 %v3906_v32, %s3586_s20  ;;  %2759 = vmatprep.subr.mxu1 %v3591_v7 }
  0xba   : > { %3472 = vrot.lane.b32.xlu0 %v3471_v33, %s3587_s21  ;;  %2931 = vmatprep.subr.bf16.mxu0 %v2930_v61 }
  0xbb   : > { %v620_v9 = vpop.permute.xlu1 %619  ;;  %v3258_v1 = vpop.permute.xlu0 %3257 }
  0xbc   : > { %2933 = vmatpush1.bf16.msra.mxu0 %v2932_v60  ;;  %v3260_v2 = vunpack.i.h.bf16 %v3258_v1  ;;  %v3259_v3 = vunpack.i.l.bf16 %v3258_v1  ;;  %2760 = vmatpush3.msra.mxu1 %v624_v57  ;;  %v625_v8 = vsel %vm377_vm8, %v620_v9, %v622_v58 }
  0xbd   : > { %646 = vmatprep.subr.mxu0 %v626_v44  ;;  %3487 = vrot.lane.b32.xlu1 %v3471_v33, %s3586_s20 }
  0xbe   : > { %v2963_v45 = vpack.c.bf16 %v3260_v2, %v3704_v12  ;;  %3482 = vrot.lane.b32.xlu0 %v3906_v32, %s3588_s22  ;;  %2962 = vmatprep.subr.bf16.mxu1 %v3585_v0  ;;  %v792_v4 = vsel %vm293_vm1, %v3259_v3, %v3260_v2 }
  0xbf   : > { %v3268_v10 = vpop.permute.xlu1 %3267  ;;  %v3945_v13 = vpop.permute.xlu0 %3262  ;;  %2762 = vmatmul.mubr.msk.f32.vlgmr.msra.gmra.mrb[2].mxu1 %vm383_vm9, %v3863_v47  ;;  %v2946_v16 = vpack.c.bf16 %v792_v4, %v3701_v11 }
  0xc0   : > { %647 = vmatpush1.msra.mxu0 %v625_v8  ;;  %v3264_v26 = vunpack.i.l.bf16 %v3945_v13  ;;  %2964 = vmatpush3.bf16.msra.mxu1 %v2963_v45  ;;  %v3270_v12 = vunpack.i.h.bf16 %v3268_v10  ;;  %v3269_v62 = vunpack.i.l.bf16 %v3268_v10 }
  0xc1   : > { %3497 = vrot.lane.b32.xlu1 %v3906_v32, %s3590_s24  ;;  %2947 = vmatprep.subr.bf16.mxu0 %v2946_v16 }
  0xc2   : > { %v791_v27 = vsel %vm293_vm1, %v3264_v26, %v3259_v3  ;;  %3492 = vrot.lane.b32.xlu0 %v3471_v33, %s3588_s22  ;;  %2545 = vmatmul.mubr.msk.f32.vlgmr.msra.gmra.mrb[2].mxu0 %vm383_vm9, %v3863_v47 }
  0xc3   : > { %v2948_v28 = vpack.c.bf16 %v791_v27, %v3713_v14  ;;  %v3958_v11 = vpop.permute.xlu1 %3277  ;;  %v3273_v29 = vpop.permute.xlu0 %3272  ;;  %2965 = vmatprep.subr.bf16.mxu1 %v3585_v0  ;;  %2782 = vmatprep.mubr.msk.f32.mxu1 %vm3594_vm0, %v3591_v7  ;;  %v803_v14 = vsel %vm305_vm2, %v3269_v62, %v3270_v12 }
  0xc4   : > { %v3275_v25 = vunpack.i.h.bf16 %v3273_v29  ;;  %v3274_v30 = vunpack.i.l.bf16 %v3273_v29  ;;  %937 = vmatprep.mubr.f32.mxu0 %v3591_v7  ;;  %v3279_v31 = vunpack.i.l.bf16 %v3958_v11 }
  0xc5   : > { %3507 = vrot.lane.b32.xlu1 %v3471_v33, %s3590_s24  ;;  %2949 = vmatpush1.bf16.msra.mxu0 %v2948_v28 }
  0xc6   : > { %v2966_v63 = vpack.c.bf16 %v3275_v25, %v3270_v12  ;;  %3502 = vrot.lane.b32.xlu0 %v3906_v32, %s3589_s23  ;;  %v814_v36 = vsel %vm317_vm3, %v3274_v30, %v3275_v25  ;;  %v802_v43 = vsel %vm305_vm2, %v3279_v31, %v3269_v62 }
  0xc7   : > { %v3288_v37 = vpop.permute.xlu1 %3287  ;;  %v3970_v38 = vpop.permute.xlu0 %3282  ;;  %v2950_v39 = vpack.c.bf16 %v814_v36, %v803_v14  ;;  %v3265_v36 = vunpack.i.h.bf16 %v3945_v13 }
  0xc8   : > { %v3284_v42 = vunpack.i.l.bf16 %v3970_v38  ;;  %2967 = vmatpush3.bf16.msra.mxu1 %v2966_v63  ;;  %v3290_v46 = vunpack.i.h.bf16 %v3288_v37  ;;  %v3289_v48 = vunpack.i.l.bf16 %v3288_v37 }
  0xc9   : > { %3512 = vrot.lane.b32.xlu1 %v3906_v32, %s3593_s26  ;;  %2951 = vmatprep.subr.bf16.mxu0 %v2950_v39 }
  0xca   : > { %v813_v49 = vsel %vm317_vm3, %v3284_v42, %v3274_v30  ;;  %1801 = vrot.lane.b32.xlu0 %v3914_v40, %s3589_s23  ;;  %2968 = vmatprep.subr.bf16.mxu1 %v3585_v0  ;;  %v825_v34 = vsel %vm329_vm4, %v3289_v48, %v3290_v46 }
  0xcb   : > { %v2952_v50 = vpack.c.bf16 %v813_v49, %v802_v43  ;;  %v3980_v51 = vpop.permute.xlu1 %3297  ;;  %v3293_v52 = vpop.permute.xlu0 %3292 }
  0xcc   : > { %v3295_v24 = vunpack.i.h.bf16 %v3293_v52  ;;  %v3294_v53 = vunpack.i.l.bf16 %v3293_v52  ;;  %v3299_v54 = vunpack.i.l.bf16 %v3980_v51 }
  0xcd   : > { %1812 = vrot.lane.b32.xlu1 %v3914_v40, %s3593_s26  ;;  %2953 = vmatpush1.bf16.msra.mxu0 %v2952_v50 }
  0xce   : > { %v2969_v33 = vpack.c.bf16 %v3295_v24, %v3290_v46  ;;  %3517 = vrot.lane.b32.xlu0 %v3906_v32, %s3592_s25  ;;  %v836_v55 = vsel %vm341_vm5, %v3294_v53, %v3295_v24  ;;  %v3521_v32 = vpack.i.bf16 %v3990_v56, %v3993_v35  ;;  %v824_v61 = vsel %vm329_vm4, %v3299_v54, %v3289_v48 }
  0xcf   : > { %v3308_v57 = vpop.permute.xlu1 %3307  ;;  %v3995_v58 = vpop.permute.xlu0 %3302  ;;  %v2954_v59 = vpack.c.bf16 %v836_v55, %v825_v34  ;;  %v3541_v46 = vpack.i.bf16 %v3993_v35, %v3917_v41  ;;  %v3285_v55 = vunpack.i.h.bf16 %v3970_v38 }
  0xd0   : > { %v3304_v60 = vunpack.i.l.bf16 %v3995_v58  ;;  %2970 = vmatpush3.bf16.msra.mxu1 %v2969_v33  ;;  %v3310_v9 = vunpack.i.h.bf16 %v3308_v57  ;;  %v3309_v1 = vunpack.i.l.bf16 %v3308_v57  ;;  %v3280_v33 = vunpack.i.h.bf16 %v3958_v11 }
  0xd1   : > { %1836 = vrot.lane.b32.xlu1 %v3892_v5, %s3595_s27  ;;  %2955 = vmatprep.subr.bf16.mxu0 %v2954_v59 }
  0xd2   : > { %v835_v2 = vsel %vm341_vm5, %v3304_v60, %v3294_v53  ;;  %1823 = vrot.lane.b32.xlu0 %v3914_v40, %s3592_s25  ;;  %2971 = vmatprep.subr.bf16.mxu1 %v3585_v0  ;;  %v847_v26 = vsel %vm353_vm6, %v3309_v1, %v3310_v9 }
  0xd3   : > { %v2956_v3 = vpack.c.bf16 %v835_v2, %v824_v61  ;;  %v4007_v44 = vpop.permute.xlu1 %3317  ;;  %v3313_v8 = vpop.permute.xlu0 %3312 }
  0xd4   : > { %v3315_v45 = vunpack.i.h.bf16 %v3313_v8  ;;  %v3314_v4 = vunpack.i.l.bf16 %v3313_v8  ;;  %v3319_v10 = vunpack.i.l.bf16 %v4007_v44 }
  0xd5   : > { %3522 = vrot.lane.b32.xlu1 %v3521_v32, %s3587_s21  ;;  %2957 = vmatpush1.bf16.msra.mxu0 %v2956_v3 }
  0xd6   : > { %v2972_v16 = vpack.c.bf16 %v3315_v45, %v3310_v9  ;;  %1838 = vrot.lane.b32.xlu0 %v3895_v6, %s3595_s27  ;;  %v858_v12 = vsel %vm365_vm7, %v3314_v4, %v3315_v45  ;;  %v846_v25 = vsel %vm353_vm6, %v3319_v10, %v3309_v1  ;;  %v3300_v45 = vunpack.i.h.bf16 %v3980_v51 }
  0xd7   : > { %v865_v62 = vpop.permute.xlu1 %864  ;;  %v4015_v27 = vpop.permute.xlu0 %3322  ;;  %v2958_v28 = vpack.c.bf16 %v858_v12, %v847_v26  ;;  %v3320_v51 = vunpack.i.h.bf16 %v4007_v44 }
  0xd8   : > { %v3324_v29 = vunpack.i.l.bf16 %v4015_v27  ;;  %2973 = vmatpush3.bf16.msra.mxu1 %v2972_v16 }
  0xd9   : > { %3527 = vrot.lane.b32.xlu1 %v3521_v32, %s3586_s20  ;;  %2959 = vmatprep.subr.bf16.mxu0 %v2958_v28 }
  0xda   : > { %v857_v30 = vsel %vm365_vm7, %v3324_v29, %v3314_v4  ;;  %1834 = vrot.lane.b32.xlu0 %v3914_v40, %s3595_s27  ;;  %2780 = vmatprep.subr.mxu1 %v3591_v7  ;;  %v3305_v4 = vunpack.i.h.bf16 %v3995_v58 }
  0xdb   : > { %v2960_v31 = vpack.c.bf16 %v857_v30, %v846_v25  ;;  %v3328_v63 = vpop.permute.xlu1 %3327  ;;  %v867_v14 = vpop.permute.xlu0 %866 }
  0xdc   : > { %v3330_v37 = vunpack.i.h.bf16 %v3328_v63  ;;  %v3329_v39 = vunpack.i.l.bf16 %v3328_v63  ;;  %2781 = vmatpush3.msra.mxu1 %v867_v14  ;;  %v869_v42 = vsel %vm377_vm8, %v865_v62, %v867_v14  ;;  %v3325_v14 = vunpack.i.h.bf16 %v4015_v27 }
  0xdd   : > { %3537 = vrot.lane.b32.xlu1 %v3521_v32, %s3590_s24  ;;  %2961 = vmatpush1.bf16.msra.mxu0 %v2960_v31 }
  0xde   : > { %v2991_v43 = vpack.c.bf16 %v3329_v39, %v3739_v18  ;;  %3532 = vrot.lane.b32.xlu0 %v3521_v32, %s3588_s22  ;;  %889 = vmatprep.subr.mxu0 %v869_v42  ;;  %v1035_v48 = vsel %vm293_vm1, %v3265_v36, %v3329_v39  ;;  %v1034_v13 = vsel %vm293_vm1, %v3330_v37, %v3265_v36 }
  0xdf   : > { %v3333_v49 = vpop.permute.xlu1 %3332  ;;  %v863_v50 = vpop.permute.xlu0 %862  ;;  %2990 = vmatprep.subr.bf16.mxu1 %v3585_v0  ;;  %2783 = vmatmul.mubr.msk.f32.vlgmr.msra.gmra.mrb[4].mxu1 %vm383_vm9, %v3863_v47  ;;  %v2974_v52 = vpack.c.bf16 %v1035_v48, %v3716_v15  ;;  %v2976_v54 = vpack.c.bf16 %v1034_v13, %v3736_v17 }
  0xe0   : > { %v868_v18 = vsel %vm377_vm8, %v863_v50, %v865_v62  ;;  %2992 = vmatpush3.bf16.msra.mxu1 %v2991_v43  ;;  %2803 = vmatprep.mubr.msk.f32.mxu1 %vm3594_vm0, %v3591_v7  ;;  %v3335_v24 = vunpack.i.h.bf16 %v3333_v49  ;;  %v3334_v53 = vunpack.i.l.bf16 %v3333_v49 }
  0xe1   : > { %2044 = vrot.lane.b32.xlu1 %v3990_v56, %s3589_s23  ;;  %890 = vmatpush1.msra.mxu0 %v868_v18 }
  0xe2   : > { %3542 = vrot.lane.b32.xlu0 %v3541_v46, %s3589_s23  ;;  %2975 = vmatprep.subr.bf16.mxu0 %v2974_v52  ;;  %v1045_v17 = vsel %vm305_vm2, %v3335_v24, %v3280_v33  ;;  %v1046_v11 = vsel %vm305_vm2, %v3280_v33, %v3334_v53  ;;  %v274_v52 = vld [vmem:[%s4366_s2] sm:$0xff] }
  0xe3   : > { %v3343_v15 = vpop.permute.xlu1 %3342  ;;  %v3338_v34 = vpop.permute.xlu0 %3337  ;;  %2553 = vmatmul.mubr.msk.f32.vlgmr.msra.gmra.mrb[4].mxu0 %vm383_vm9, %v3863_v47  ;;  %2993 = vmatprep.subr.bf16.mxu1 %v3585_v0 }
  0xe4   : > { %v3340_v57 = vunpack.i.h.bf16 %v3338_v34  ;;  %v3339_v59 = vunpack.i.l.bf16 %v3338_v34  ;;  %2977 = vmatpush1.bf16.msra.mxu0 %v2976_v54  ;;  %1180 = vmatprep.mubr.f32.mxu0 %v3591_v7  ;;  %v3345_v60 = vunpack.i.h.bf16 %v3343_v15  ;;  %v3344_v38 = vunpack.i.l.bf16 %v3343_v15 }
  0xe5   : > { %3552 = vrot.lane.b32.xlu1 %v3541_v46, %s3592_s25 }
  0xe6   : > { %v1056_v32 = vsel %vm317_vm3, %v3340_v57, %v3285_v55  ;;  %v2994_v61 = vpack.c.bf16 %v3339_v59, %v3334_v53  ;;  %3547 = vrot.lane.b32.xlu0 %v3541_v46, %s3593_s26  ;;  %v1057_v9 = vsel %vm317_vm3, %v3285_v55, %v3339_v59  ;;  %v1067_v62 = vsel %vm329_vm4, %v3345_v60, %v3300_v45 }
  0xe7   : > { %v2980_v1 = vpack.c.bf16 %v1056_v32, %v1045_v17  ;;  %v3353_v2 = vpop.permute.xlu1 %3352  ;;  %v3348_v3 = vpop.permute.xlu0 %3347  ;;  %v2978_v8 = vpack.c.bf16 %v1057_v9, %v1046_v11  ;;  %v1068_v31 = vsel %vm329_vm4, %v3300_v45, %v3344_v38 }
  0xe8   : > { %v3350_v10 = vunpack.i.h.bf16 %v3348_v3  ;;  %v3349_v16 = vunpack.i.l.bf16 %v3348_v3  ;;  %2995 = vmatpush3.bf16.msra.mxu1 %v2994_v61  ;;  %v3355_v26 = vunpack.i.h.bf16 %v3353_v2  ;;  %v3354_v12 = vunpack.i.l.bf16 %v3353_v2 }
  0xe9   : > { %2066 = vrot.lane.b32.xlu1 %v3990_v56, %s3592_s25  ;;  %2979 = vmatprep.subr.bf16.mxu0 %v2978_v8 }
  0xea   : > { %v1078_v28 = vsel %vm341_vm5, %v3350_v10, %v3305_v4  ;;  %v2997_v29 = vpack.c.bf16 %v3349_v16, %v3344_v38  ;;  %2055 = vrot.lane.b32.xlu0 %v3990_v56, %s3593_s26  ;;  %2981 = vmatpush1.bf16.msra.mxu0 %v2980_v1  ;;  %v1079_v63 = vsel %vm341_vm5, %v3305_v4, %v3349_v16 }
  0xeb   : > { %v2984_v58 = vpack.c.bf16 %v1078_v28, %v1067_v62  ;;  %v1108_v25 = vpop.permute.xlu1 %1107  ;;  %v3358_v30 = vpop.permute.xlu0 %3357  ;;  %2996 = vmatprep.subr.bf16.mxu1 %v3585_v0  ;;  %v2982_v39 = vpack.c.bf16 %v1079_v63, %v1068_v31  ;;  %v1089_v42 = vsel %vm353_vm6, %v3355_v26, %v3320_v51  ;;  %v1090_v44 = vsel %vm353_vm6, %v3320_v51, %v3354_v12 }
  0xec   : > { %v3360_v36 = vunpack.i.h.bf16 %v3358_v30  ;;  %v3359_v37 = vunpack.i.l.bf16 %v3358_v30  ;;  %2998 = vmatpush3.bf16.msra.mxu1 %v2997_v29 }
  0xed   : > { %2081 = vrot.lane.b32.xlu1 %v3993_v35, %s3595_s27  ;;  %2999 = vmatprep.subr.bf16.mxu1 %v3585_v0 }
  0xee   : > { %v1100_v43 = vsel %vm365_vm7, %v3360_v36, %v3325_v14  ;;  %v3000_v46 = vpack.c.bf16 %v3359_v37, %v3354_v12  ;;  %2079 = vrot.lane.b32.xlu0 %v3917_v41, %s3595_s27  ;;  %2983 = vmatprep.subr.bf16.mxu0 %v2982_v39  ;;  %v1101_v27 = vsel %vm365_vm7, %v3325_v14, %v3359_v37 }
  0xef   : > { %v2988_v48 = vpack.c.bf16 %v1100_v43, %v1089_v42  ;;  %2985 = vmatpush1.bf16.msra.mxu0 %v2984_v58  ;;  %v3363_v13 = vpop.permute.xlu1 %3362  ;;  %v1110_v49 = vpop.permute.xlu0 %1109  ;;  %v2986_v50 = vpack.c.bf16 %v1101_v27, %v1090_v44 }
  0xf0   : > { %v3365_v18 = vunpack.i.h.bf16 %v3363_v13  ;;  %v3364_v24 = vunpack.i.l.bf16 %v3363_v13  ;;  %3001 = vmatpush3.bf16.msra.mxu1 %v3000_v46  ;;  %v1112_v54 = vsel %vm377_vm8, %v1108_v25, %v1110_v49 }
  0xf1   : > { %2987 = vmatprep.subr.bf16.mxu0 %v2986_v50  ;;  %2801 = vmatprep.subr.mxu1 %v3591_v7 }
  0xf2   : > { %2077 = vrot.lane.b32.xlu0 %v3990_v56, %s3595_s27  ;;  %277 = vperm.xlu1 %3556, %v274_v52   ;;  %v1278_v33 = vsel %vm293_vm1, %v3364_v24, %v3365_v18  ;;  %v3019_v15 = vpack.c.bf16 %v3365_v18, %v3760_v21 }
  0xf3   : > { %2989 = vmatpush1.bf16.msra.mxu0 %v2988_v48  ;;  %v4084_v41 = vpop.permute.xlu1 %3367  ;;  %v1106_v53 = vpop.permute.xlu0 %1105  ;;  %v3002_v59 = vpack.c.bf16 %v1278_v33, %v3757_v20 }
  0xf4   : > { %v3369_v34 = vunpack.i.l.bf16 %v4084_v41  ;;  %v1111_v55 = vsel %vm377_vm8, %v1106_v53, %v1108_v25  ;;  %1132 = vmatprep.subr.mxu0 %v1112_v54  ;;  %2802 = vmatpush3.msra.mxu1 %v1110_v49 }
  0xf5   : > { %2804 = vmatmul.mubr.msk.f32.vlgmr.msra.gmra.mrb[6].mxu1 %vm383_vm9, %v3863_v47  ;;  %3018 = vmatprep.subr.bf16.mxu1 %v3585_v0 }
  0xf6   : > { %v1277_v57 = vsel %vm293_vm1, %v3369_v34, %v3364_v24  ;;  %3020 = vmatpush3.bf16.msra.mxu1 %v3019_v15  ;;  %2824 = vmatprep.mubr.msk.f32.mxu1 %vm3594_vm0, %v3591_v7 }
  0xf7   : > { %v3004_v21 = vpack.c.bf16 %v1277_v57, %v3768_v23  ;;  %1133 = vmatpush1.msra.mxu0 %v1111_v55  ;;  %v3378_v17 = vpop.permute.xlu1 %3377  ;;  %v3373_v11 = vpop.permute.xlu0 %3372  ;;  %3021 = vmatprep.subr.bf16.mxu1 %v3585_v0 }
  0xf8   : > { %v3380_v60 = vunpack.i.h.bf16 %v3378_v17  ;;  %v3379_v32 = vunpack.i.l.bf16 %v3378_v17  ;;  %v3375_v61 = vunpack.i.h.bf16 %v3373_v11  ;;  %v3374_v9 = vunpack.i.l.bf16 %v3373_v11  ;;  %2561 = vmatmul.mubr.msk.f32.vlgmr.msra.gmra.mrb[6].mxu0 %vm383_vm9, %v3863_v47  ;;  %3003 = vmatprep.subr.bf16.mxu0 %v3002_v59 }
  0xf9   : > { %3005 = vmatpush1.bf16.msra.mxu0 %v3004_v21  ;;  %1423 = vmatprep.mubr.f32.mxu0 %v3591_v7 }
  0xfa   : > { %v3022_v20 = vpack.c.bf16 %v3380_v60, %v3375_v61  ;;  %v1289_v38 = vsel %vm305_vm2, %v3374_v9, %v3375_v61  ;;  %v1300_v23 = vsel %vm317_vm3, %v3379_v32, %v3380_v60  ;;  %v3370_v61 = vunpack.i.h.bf16 %v4084_v41 }
  0xfb   : > { %v4105_v1 = vpop.permute.xlu1 %3387  ;;  %v4107_v2 = vpop.permute.xlu0 %3382  ;;  %v3006_v3 = vpack.c.bf16 %v1300_v23, %v1289_v38 }
  0xfc   : > { %v3389_v8 = vunpack.i.l.bf16 %v4105_v1  ;;  %v3384_v45 = vunpack.i.l.bf16 %v4107_v2  ;;  %3023 = vmatpush3.bf16.msra.mxu1 %v3022_v20  ;;  %v3390_v38 = vunpack.i.h.bf16 %v4105_v1  ;;  %v3385_v1 = vunpack.i.h.bf16 %v4107_v2 }
  0xfd   : > { %3007 = vmatprep.subr.bf16.mxu0 %v3006_v3  ;;  %3024 = vmatprep.subr.bf16.mxu1 %v3585_v0 }
  0xfe   : > { %v1299_v4 = vsel %vm317_vm3, %v3389_v8, %v3379_v32  ;;  %v1288_v10 = vsel %vm305_vm2, %v3384_v45, %v3374_v9 }
  0xff   : > { %v3008_v16 = vpack.c.bf16 %v1299_v4, %v1288_v10  ;;  %v3398_v26 = vpop.permute.xlu1 %3397 }
 0x100   : > { %v3400_v12 = vunpack.i.h.bf16 %v3398_v26  ;;  %v3399_v62 = vunpack.i.l.bf16 %v3398_v26  ;;  %v3393_v28 = vpop.permute.xlu0 %3392  ;;  %v3558_v26 = vld [vmem:[%s3644_s19 + $0x80] sm:$0xff] }
 0x101   : > { %v3395_v29 = vunpack.i.h.bf16 %v3393_v28  ;;  %v3394_v51 = vunpack.i.l.bf16 %v3393_v28  ;;  %3009 = vmatpush1.bf16.msra.mxu0 %v3008_v16 }
 0x102   : > { %v1322_v58 = vsel %vm341_vm5, %v3399_v62, %v3400_v12 }
 0x103   : > { %v3025_v25 = vpack.c.bf16 %v3400_v12, %v3395_v29  ;;  %v4115_v30 = vpop.permute.xlu1 %3407  ;;  %v1311_v31 = vsel %vm329_vm4, %v3394_v51, %v3395_v29 }
 0x104   : > { %v3409_v63 = vunpack.i.l.bf16 %v4115_v30  ;;  %v4119_v14 = vpop.permute.xlu0 %3402  ;;  %v3010_v36 = vpack.c.bf16 %v1322_v58, %v1311_v31 }
 0x105   : > { %v3404_v37 = vunpack.i.l.bf16 %v4119_v14  ;;  %3026 = vmatpush3.bf16.msra.mxu1 %v3025_v25 }
 0x106   : > { %v1321_v39 = vsel %vm341_vm5, %v3409_v63, %v3399_v62  ;;  %3011 = vmatprep.subr.bf16.mxu0 %v3010_v36  ;;  %3027 = vmatprep.subr.bf16.mxu1 %v3585_v0 }
 0x107   : > { %v1310_v42 = vsel %vm329_vm4, %v3404_v37, %v3394_v51  ;;  %v3418_v44 = vpop.permute.xlu1 %3417 }
 0x108   : > { %v3012_v43 = vpack.c.bf16 %v1321_v39, %v1310_v42  ;;  %v3420_v46 = vunpack.i.h.bf16 %v3418_v44  ;;  %v3419_v27 = vunpack.i.l.bf16 %v3418_v44  ;;  %v3413_v48 = vpop.permute.xlu0 %3412  ;;  %v3405_v39 = vunpack.i.h.bf16 %v4119_v14 }
 0x109   : > { %v3415_v13 = vunpack.i.h.bf16 %v3413_v48  ;;  %v3414_v49 = vunpack.i.l.bf16 %v3413_v48 }
 0x10a   : > { %3013 = vmatpush1.bf16.msra.mxu0 %v3012_v43  ;;  %v1344_v50 = vsel %vm365_vm7, %v3419_v27, %v3420_v46 }
 0x10b   : > { %v3028_v52 = vpack.c.bf16 %v3420_v46, %v3415_v13  ;;  %v4128_v18 = vpop.permute.xlu1 %3427  ;;  %v1333_v24 = vsel %vm353_vm6, %v3414_v49, %v3415_v13 }
 0x10c   : > { %v3429_v53 = vunpack.i.l.bf16 %v4128_v18  ;;  %v4132_v54 = vpop.permute.xlu0 %3422  ;;  %v3014_v33 = vpack.c.bf16 %v1344_v50, %v1333_v24  ;;  %v3430_v46 = vunpack.i.h.bf16 %v4128_v18 }
 0x10d   : > { %v3424_v15 = vunpack.i.l.bf16 %v4132_v54  ;;  %3029 = vmatpush3.bf16.msra.mxu1 %v3028_v52 }
 0x10e   : > { %v1343_v34 = vsel %vm365_vm7, %v3429_v53, %v3419_v27  ;;  %3015 = vmatprep.subr.bf16.mxu0 %v3014_v33  ;;  %2822 = vmatprep.subr.mxu1 %v3591_v7  ;;  %v3425_v33 = vunpack.i.h.bf16 %v4132_v54 }
 0x10f   : > { %v1332_v55 = vsel %vm353_vm6, %v3424_v15, %v3414_v49  ;;  %v1353_v57 = vpop.permute.xlu1 %1352 }
 0x110   : > { %v3016_v59 = vpack.c.bf16 %v1343_v34, %v1332_v55  ;;  %v1351_v21 = vpop.permute.xlu0 %1350 }
 0x111   : > { %2823 = vmatpush3.msra.mxu1 %v1353_v57  ;;  %v1355_v17 = vsel %vm377_vm8, %v1351_v21, %v1353_v57 }
 0x112   : > { %3017 = vmatpush1.bf16.msra.mxu0 %v3016_v59  ;;  %2825 = vmatmul.mubr.msk.f32.vlgmr.msra.gmra.mrb[8].mxu1 %vm383_vm9, %v3863_v47 }
 0x113   : > { %1375 = vmatprep.subr.mxu0 %v1355_v17  ;;  %v1349_v11 = vpop.permute.xlu1 %1348  ;;  %3046 = vmatprep.subr.bf16.mxu1 %v3585_v0 }
 0x114   : > { %v1354_v60 = vsel %vm377_vm8, %v1349_v11, %v1351_v21  ;;  %v3433_v32 = vpop.permute.xlu0 %3432  ;;  %2845 = vmatprep.mubr.msk.f32.mxu1 %vm3594_vm0, %v3591_v7 }
 0x115   : > { %v3435_v9 = vunpack.i.h.bf16 %v3433_v32  ;;  %v3434_v20 = vunpack.i.l.bf16 %v3433_v32 }
 0x116   : > { %1376 = vmatpush1.msra.mxu0 %v1354_v60 }
 0x117   : > { %v1520_v23 = vsel %vm293_vm1, %v3435_v9, %v3370_v61  ;;  %v3047_v3 = vpack.c.bf16 %v3434_v20, %v3837_v22  ;;  %2569 = vmatmul.mubr.msk.f32.vlgmr.msra.gmra.mrb[8].mxu0 %vm383_vm9, %v3863_v47  ;;  %v3443_v8 = vpop.permute.xlu1 %3442  ;;  %v1521_v45 = vsel %vm293_vm1, %v3370_v61, %v3434_v20 }
 0x118   : > { %v3032_v4 = vpack.c.bf16 %v1520_v23, %v3834_v19  ;;  %v3445_v10 = vunpack.i.h.bf16 %v3443_v8  ;;  %v3444_v16 = vunpack.i.l.bf16 %v3443_v8  ;;  %v3438_v41 = vpop.permute.xlu0 %3437  ;;  %v3030_v12 = vpack.c.bf16 %v1521_v45, %v3558_v26  ;;  %1666 = vmatprep.mubr.f32.mxu0 %v3591_v7 }
 0x119   : > { %v3440_v62 = vunpack.i.h.bf16 %v3438_v41  ;;  %v3439_v28 = vunpack.i.l.bf16 %v3438_v41  ;;  %3048 = vmatpush3.bf16.msra.mxu1 %v3047_v3  ;;  %v3410_v19 = vunpack.i.h.bf16 %v4115_v30  ;;  %v4181_v3 = vld [vmem:[%s4365_s1] sm:$0xff] }
 0x11a   : > { %v1542_v22 = vsel %vm317_vm3, %v3445_v10, %v3390_v38  ;;  %3031 = vmatprep.subr.bf16.mxu0 %v3030_v12  ;;  %3049 = vmatprep.subr.bf16.mxu1 %v3585_v0  ;;  %v1543_v47 = vsel %vm317_vm3, %v3390_v38, %v3444_v16 }
 0x11b   : > { %v1531_v29 = vsel %vm305_vm2, %v3440_v62, %v3385_v1  ;;  %v3050_v51 = vpack.c.bf16 %v3444_v16, %v3439_v28  ;;  %3033 = vmatpush1.bf16.msra.mxu0 %v3032_v4  ;;  %v3453_v58 = vpop.permute.xlu1 %3452  ;;  %v1532_v25 = vsel %vm305_vm2, %v3385_v1, %v3439_v28 }
 0x11c   : > { %v3036_v2 = vpack.c.bf16 %v1542_v22, %v1531_v29  ;;  %v3455_v31 = vunpack.i.h.bf16 %v3453_v58  ;;  %v3454_v63 = vunpack.i.l.bf16 %v3453_v58  ;;  %v3448_v36 = vpop.permute.xlu0 %3447  ;;  %v3034_v37 = vpack.c.bf16 %v1543_v47, %v1532_v25 }
 0x11d   : > { %v3450_v42 = vunpack.i.h.bf16 %v3448_v36  ;;  %v3449_v44 = vunpack.i.l.bf16 %v3448_v36  ;;  %3051 = vmatpush3.bf16.msra.mxu1 %v3050_v51 }
 0x11e   : > { %v1564_v43 = vsel %vm341_vm5, %v3455_v31, %v3410_v19  ;;  %3035 = vmatprep.subr.bf16.mxu0 %v3034_v37  ;;  %3052 = vmatprep.subr.bf16.mxu1 %v3585_v0  ;;  %v1565_v30 = vsel %vm341_vm5, %v3410_v19, %v3454_v63 }
 0x11f   : > { %v1553_v27 = vsel %vm329_vm4, %v3450_v42, %v3405_v39  ;;  %v3053_v48 = vpack.c.bf16 %v3454_v63, %v3449_v44  ;;  %3037 = vmatpush1.bf16.msra.mxu0 %v3036_v2  ;;  %v3463_v13 = vpop.permute.xlu1 %3462  ;;  %v1554_v49 = vsel %vm329_vm4, %v3405_v39, %v3449_v44 }
 0x120   : > { %v3040_v14 = vpack.c.bf16 %v1564_v43, %v1553_v27  ;;  %v3465_v50 = vunpack.i.h.bf16 %v3463_v13  ;;  %v3464_v52 = vunpack.i.l.bf16 %v3463_v13  ;;  %v3458_v24 = vpop.permute.xlu0 %3457  ;;  %v3038_v53 = vpack.c.bf16 %v1565_v30, %v1554_v49 }
 0x121   : > { %v3460_v15 = vunpack.i.h.bf16 %v3458_v24  ;;  %v3459_v34 = vunpack.i.l.bf16 %v3458_v24  ;;  %3054 = vmatpush3.bf16.msra.mxu1 %v3053_v48 }
 0x122   : > { %v1586_v55 = vsel %vm365_vm7, %v3465_v50, %v3430_v46  ;;  %3039 = vmatprep.subr.bf16.mxu0 %v3038_v53  ;;  %3055 = vmatprep.subr.bf16.mxu1 %v3585_v0  ;;  %v1587_v18 = vsel %vm365_vm7, %v3430_v46, %v3464_v52 }
 0x123   : > { %v1575_v57 = vsel %vm353_vm6, %v3460_v15, %v3425_v33  ;;  %v3056_v59 = vpack.c.bf16 %v3464_v52, %v3459_v34  ;;  %3041 = vmatpush1.bf16.msra.mxu0 %v3040_v14  ;;  %v1596_v21 = vpop.permute.xlu1 %1595  ;;  %v1576_v17 = vsel %vm353_vm6, %v3425_v33, %v3459_v34 }
 0x124   : > { %v3044_v11 = vpack.c.bf16 %v1586_v55, %v1575_v57  ;;  %v1594_v60 = vpop.permute.xlu0 %1593  ;;  %v3042_v54 = vpack.c.bf16 %v1587_v18, %v1576_v17 }
 0x125   : > { %3057 = vmatpush3.bf16.msra.mxu1 %v3056_v59  ;;  %v1598_v61 = vsel %vm377_vm8, %v1594_v60, %v1596_v21 }
 0x126   : > { %3043 = vmatprep.subr.bf16.mxu0 %v3042_v54  ;;  %2843 = vmatprep.subr.mxu1 %v3591_v7 }
 0x127   : > { %3045 = vmatpush1.bf16.msra.mxu0 %v3044_v11  ;;  %v1592_v32 = vpop.permute.xlu1 %1591 }
 0x128   : > { %v1597_v9 = vsel %vm377_vm8, %v1592_v32, %v1594_v60  ;;  %v3468_v20 = vpop.permute.xlu0 %3467  ;;  %1618 = vmatprep.subr.mxu0 %v1598_v61 }
 0x129   : > { %v3470_v38 = vunpack.i.h.bf16 %v3468_v20  ;;  %v3469_v23 = vunpack.i.l.bf16 %v3468_v20  ;;  %2844 = vmatpush3.msra.mxu1 %v1596_v21 }
 0x12a   : > { %2846 = vmatmul.mubr.msk.f32.vlgmr.msra.gmra.mrb[10].mxu1 %vm383_vm9, %v4181_v3  ;;  %3074 = vmatprep.subr.bf16.mxu1 %v3585_v0 }
 0x12b   : > { %v3075_v8 = vpack.c.bf16 %v3470_v38, %v3895_v6  ;;  %1619 = vmatpush1.msra.mxu0 %v1597_v9  ;;  %v3478_v45 = vpop.permute.xlu1 %3477  ;;  %v1764_v4 = vsel %vm293_vm1, %v3469_v23, %v3470_v38  ;;  %2866 = vmatprep.mubr.msk.f32.mxu1 %vm3594_vm0, %v3591_v7 }
 0x12c   : > { %v4190_v10 = vpop.permute.xlu0 %3472  ;;  %2577 = vmatmul.mubr.msk.f32.vlgmr.msra.gmra.mrb[10].mxu0 %vm383_vm9, %v4181_v3  ;;  %v3058_v16 = vpack.c.bf16 %v1764_v4, %v3892_v5  ;;  %v3480_v6 = vunpack.i.h.bf16 %v3478_v45  ;;  %v3479_v26 = vunpack.i.l.bf16 %v3478_v45 }
 0x12d   : > { %v3474_v41 = vunpack.i.l.bf16 %v4190_v10  ;;  %3076 = vmatpush3.bf16.msra.mxu1 %v3075_v8  ;;  %1909 = vmatprep.mubr.f32.mxu0 %v3591_v7  ;;  %v3475_v38 = vunpack.i.h.bf16 %v4190_v10  ;;  %v3560_v10 = vld [vmem:[%s3644_s19 + $0xb0] sm:$0xff] }
 0x12e   : > { %3059 = vmatprep.subr.bf16.mxu0 %v3058_v16  ;;  %3077 = vmatprep.subr.bf16.mxu1 %v3585_v0  ;;  %v1775_v51 = vsel %vm305_vm2, %v3479_v26, %v3480_v6 }
 0x12f   : > { %v1763_v12 = vsel %vm293_vm1, %v3474_v41, %v3469_v23  ;;  %v4199_v1 = vpop.permute.xlu1 %3487 }
 0x130   : > { %v3060_v62 = vpack.c.bf16 %v1763_v12, %v3914_v40  ;;  %v3483_v28 = vpop.permute.xlu0 %3482  ;;  %v3489_v5 = vunpack.i.l.bf16 %v4199_v1 }
 0x131   : > { %v3485_v22 = vunpack.i.h.bf16 %v3483_v28  ;;  %v3484_v47 = vunpack.i.l.bf16 %v3483_v28 }
 0x132   : > { %3061 = vmatpush1.bf16.msra.mxu0 %v3060_v62  ;;  %v1774_v40 = vsel %vm305_vm2, %v3489_v5, %v3479_v26 }
 0x133   : > { %v3078_v19 = vpack.c.bf16 %v3485_v22, %v3480_v6  ;;  %v3498_v29 = vpop.permute.xlu1 %3497  ;;  %v1786_v58 = vsel %vm317_vm3, %v3484_v47, %v3485_v22 }
 0x134   : > { %v4205_v25 = vpop.permute.xlu0 %3492  ;;  %v3062_v2 = vpack.c.bf16 %v1786_v58, %v1775_v51  ;;  %v3500_v63 = vunpack.i.h.bf16 %v3498_v29  ;;  %v3499_v36 = vunpack.i.l.bf16 %v3498_v29 }
 0x135   : > { %v3494_v31 = vunpack.i.l.bf16 %v4205_v25  ;;  %3079 = vmatpush3.bf16.msra.mxu1 %v3078_v19  ;;  %v3490_v19 = vunpack.i.h.bf16 %v4199_v1  ;;  %v3495_v51 = vunpack.i.h.bf16 %v4205_v25 }
 0x136   : > { %3063 = vmatprep.subr.bf16.mxu0 %v3062_v2  ;;  %3080 = vmatprep.subr.bf16.mxu1 %v3585_v0  ;;  %v1797_v13 = vsel %vm329_vm4, %v3499_v36, %v3500_v63 }
 0x137   : > { %v1785_v37 = vsel %vm317_vm3, %v3494_v31, %v3484_v47  ;;  %v4211_v39 = vpop.permute.xlu1 %3507 }
 0x138   : > { %v3064_v42 = vpack.c.bf16 %v1785_v37, %v1774_v40  ;;  %v3503_v44 = vpop.permute.xlu0 %3502  ;;  %v3509_v43 = vunpack.i.l.bf16 %v4211_v39 }
 0x139   : > { %v3505_v30 = vunpack.i.h.bf16 %v3503_v44  ;;  %v3504_v46 = vunpack.i.l.bf16 %v3503_v44  ;;  %v3510_v44 = vunpack.i.h.bf16 %v4211_v39 }
 0x13a   : > { %3065 = vmatpush1.bf16.msra.mxu0 %v3064_v42  ;;  %v1796_v52 = vsel %vm329_vm4, %v3509_v43, %v3499_v36 }
 0x13b   : > { %v3081_v27 = vpack.c.bf16 %v3505_v30, %v3500_v63  ;;  %v3513_v48 = vpop.permute.xlu1 %3512  ;;  %v1808_v49 = vsel %vm341_vm5, %v3504_v46, %v3505_v30 }
 0x13c   : > { %v1802_v14 = vpop.permute.xlu0 %1801  ;;  %v3066_v50 = vpack.c.bf16 %v1808_v49, %v1797_v13  ;;  %v3515_v33 = vunpack.i.h.bf16 %v3513_v48  ;;  %v3514_v15 = vunpack.i.l.bf16 %v3513_v48 }
 0x13d   : > { %v1807_v24 = vsel %vm341_vm5, %v1802_v14, %v3504_v46  ;;  %3082 = vmatpush3.bf16.msra.mxu1 %v3081_v27 }
 0x13e   : > { %v3068_v53 = vpack.c.bf16 %v1807_v24, %v1796_v52  ;;  %3067 = vmatprep.subr.bf16.mxu0 %v3066_v50  ;;  %3083 = vmatprep.subr.bf16.mxu1 %v3585_v0  ;;  %v1819_v17 = vsel %vm353_vm6, %v3514_v15, %v3515_v33 }
 0x13f   : > { %v1813_v34 = vpop.permute.xlu1 %1812 }
 0x140   : > { %v3518_v55 = vpop.permute.xlu0 %3517  ;;  %3069 = vmatpush1.bf16.msra.mxu0 %v3068_v53  ;;  %v1818_v32 = vsel %vm353_vm6, %v1813_v34, %v3514_v15 }
 0x141   : > { %v3520_v18 = vunpack.i.h.bf16 %v3518_v55  ;;  %v3519_v57 = vunpack.i.l.bf16 %v3518_v55 }
 0x143   : > { %v3084_v59 = vpack.c.bf16 %v3520_v18, %v3515_v33  ;;  %v1837_v21 = vpop.permute.xlu1 %1836  ;;  %v1830_v11 = vsel %vm365_vm7, %v3519_v57, %v3520_v18 }
 0x144   : > { %v1824_v60 = vpop.permute.xlu0 %1823  ;;  %v3070_v54 = vpack.c.bf16 %v1830_v11, %v1819_v17 }
 0x145   : > { %v1829_v61 = vsel %vm365_vm7, %v1824_v60, %v3519_v57  ;;  %3085 = vmatpush3.bf16.msra.mxu1 %v3084_v59 }
 0x146   : > { %v3072_v9 = vpack.c.bf16 %v1829_v61, %v1818_v32  ;;  %3071 = vmatprep.subr.bf16.mxu0 %v3070_v54  ;;  %2864 = vmatprep.subr.mxu1 %v3591_v7 }
 0x147   : > { %v3523_v20 = vpop.permute.xlu1 %3522 }
 0x148   : > { %v3525_v23 = vunpack.i.h.bf16 %v3523_v20  ;;  %v3524_v8 = vunpack.i.l.bf16 %v3523_v20  ;;  %v1839_v45 = vpop.permute.xlu0 %1838  ;;  %3073 = vmatpush1.bf16.msra.mxu0 %v3072_v9 }
 0x149   : > { %2865 = vmatpush3.msra.mxu1 %v1839_v45  ;;  %v1841_v4 = vsel %vm377_vm8, %v1837_v21, %v1839_v45 }
 0x14a   : > { %v3103_v16 = vpack.c.bf16 %v3524_v8, %v3993_v35  ;;  %1861 = vmatprep.subr.mxu0 %v1841_v4  ;;  %2867 = vmatmul.mubr.msk.f32.vlgmr.msra.gmra.mrb[12].mxu1 %vm383_vm9, %v4181_v3  ;;  %v2007_v41 = vsel %vm293_vm1, %v3475_v38, %v3524_v8  ;;  %v2006_v6 = vsel %vm293_vm1, %v3525_v23, %v3475_v38 }
 0x14b   : > { %v3528_v26 = vpop.permute.xlu1 %3527  ;;  %3102 = vmatprep.subr.bf16.mxu1 %v3585_v0  ;;  %v3086_v12 = vpack.c.bf16 %v2007_v41, %v3560_v10  ;;  %2887 = vmatprep.mubr.msk.f32.mxu1 %vm3594_vm0, %v3591_v7  ;;  %v3088_v28 = vpack.c.bf16 %v2006_v6, %v3990_v56  ;;  %v2238_v6 = vld [vmem:[#allocation2 + $0x10] sm:$0xff] }
 0x14c   : > { %v1835_v62 = vpop.permute.xlu0 %1834  ;;  %3104 = vmatpush3.bf16.msra.mxu1 %v3103_v16  ;;  %v3530_v22 = vunpack.i.h.bf16 %v3528_v26  ;;  %v3529_v47 = vunpack.i.l.bf16 %v3528_v26 }
 0x14d   : > { %v1840_v35 = vsel %vm377_vm8, %v1835_v62, %v1837_v21  ;;  %3105 = vmatprep.subr.bf16.mxu1 %v3585_v0 }
 0x14e   : > { %1862 = vmatpush1.msra.mxu0 %v1840_v35  ;;  %v2017_v56 = vsel %vm305_vm2, %v3530_v22, %v3490_v19  ;;  %v2018_v40 = vsel %vm305_vm2, %v3490_v19, %v3529_v47 }
 0x14f   : > { %2585 = vmatmul.mubr.msk.f32.vlgmr.msra.gmra.mrb[12].mxu0 %vm383_vm9, %v4181_v3  ;;  %3087 = vmatprep.subr.bf16.mxu0 %v3086_v12  ;;  %v3538_v5 = vpop.permute.xlu1 %3537 }
 0x150   : > { %v3533_v29 = vpop.permute.xlu0 %3532  ;;  %3089 = vmatpush1.bf16.msra.mxu0 %v3088_v28  ;;  %2152 = vmatprep.mubr.f32.mxu0 %v3591_v7  ;;  %v3540_v31 = vunpack.i.h.bf16 %v3538_v5  ;;  %v3539_v63 = vunpack.i.l.bf16 %v3538_v5 }
 0x151   : > { %v3535_v58 = vunpack.i.h.bf16 %v3533_v29  ;;  %v3534_v2 = vunpack.i.l.bf16 %v3533_v29 }
 0x152   : > { %v2039_v48 = vsel %vm329_vm4, %v3540_v31, %v3510_v44  ;;  %v2040_v50 = vsel %vm329_vm4, %v3510_v44, %v3539_v63 }
 0x153   : > { %v2028_v36 = vsel %vm317_vm3, %v3535_v58, %v3495_v51  ;;  %v3106_v37 = vpack.c.bf16 %v3534_v2, %v3529_v47  ;;  %v2045_v42 = vpop.permute.xlu1 %2044  ;;  %v2029_v1 = vsel %vm317_vm3, %v3495_v51, %v3534_v2 }
 0x154   : > { %v3092_v43 = vpack.c.bf16 %v2028_v36, %v2017_v56  ;;  %v3543_v30 = vpop.permute.xlu0 %3542  ;;  %v3090_v46 = vpack.c.bf16 %v2029_v1, %v2018_v40 }
 0x155   : > { %v3545_v25 = vunpack.i.h.bf16 %v3543_v30  ;;  %v3544_v27 = vunpack.i.l.bf16 %v3543_v30  ;;  %3107 = vmatpush3.bf16.msra.mxu1 %v3106_v37 }
 0x156   : > { %3091 = vmatprep.subr.bf16.mxu0 %v3090_v46  ;;  %3108 = vmatprep.subr.bf16.mxu1 %v3585_v0 }
 0x157   : > { %v3109_v13 = vpack.c.bf16 %v3545_v25, %v3539_v63  ;;  %v2050_v49 = vsel %vm341_vm5, %v2045_v42, %v3544_v27  ;;  %3093 = vmatpush1.bf16.msra.mxu0 %v3092_v43  ;;  %v3553_v14 = vpop.permute.xlu1 %3552  ;;  %v2051_v39 = vsel %vm341_vm5, %v3544_v27, %v3545_v25 }
 0x158   : > { %v3096_v52 = vpack.c.bf16 %v2050_v49, %v2039_v48  ;;  %v3555_v24 = vunpack.i.h.bf16 %v3553_v14  ;;  %v3554_v53 = vunpack.i.l.bf16 %v3553_v14  ;;  %v3548_v33 = vpop.permute.xlu0 %3547  ;;  %v3094_v15 = vpack.c.bf16 %v2051_v39, %v2040_v50 }
 0x159   : > { %v3550_v34 = vunpack.i.h.bf16 %v3548_v33  ;;  %v3549_v55 = vunpack.i.l.bf16 %v3548_v33  ;;  %3110 = vmatpush3.bf16.msra.mxu1 %v3109_v13 }
 0x15a   : > { %3095 = vmatprep.subr.bf16.mxu0 %v3094_v15  ;;  %3111 = vmatprep.subr.bf16.mxu1 %v3585_v0  ;;  %v2073_v18 = vsel %vm365_vm7, %v3554_v53, %v3555_v24 }
 0x15b   : > { %v3112_v57 = vpack.c.bf16 %v3555_v24, %v3550_v34  ;;  %3097 = vmatpush1.bf16.msra.mxu0 %v3096_v52  ;;  %v2067_v59 = vpop.permute.xlu1 %2066  ;;  %v2062_v21 = vsel %vm353_vm6, %v3549_v55, %v3550_v34 }
 0x15c   : > { %v2072_v17 = vsel %vm365_vm7, %v2067_v59, %v3554_v53  ;;  %v2056_v11 = vpop.permute.xlu0 %2055  ;;  %v3098_v60 = vpack.c.bf16 %v2073_v18, %v2062_v21 }
 0x15d   : > { %v2061_v54 = vsel %vm353_vm6, %v2056_v11, %v3549_v55  ;;  %3113 = vmatpush3.bf16.msra.mxu1 %v3112_v57 }
 0x15e   : > { %v3100_v32 = vpack.c.bf16 %v2072_v17, %v2061_v54  ;;  %3099 = vmatprep.subr.bf16.mxu0 %v3098_v60  ;;  %2885 = vmatprep.subr.mxu1 %v3591_v7 }
 0x15f   : > { %v2082_v0 = vpop.permute.xlu1 %2081 }
 0x160   : > { %v2080_v61 = vpop.permute.xlu0 %2079  ;;  %3101 = vmatpush1.bf16.msra.mxu0 %v3100_v32 }
 0x161   : > { %2886 = vmatpush3.msra.mxu1 %v2082_v0  ;;  %v2084_v9 = vsel %vm377_vm8, %v2080_v61, %v2082_v0 }
 0x162   : > { %2104 = vmatprep.subr.mxu0 %v2084_v9  ;;  %2888 = vmatmul.mubr.msk.f32.vlgmr.msra.gmra.mrb[14].mxu1 %vm383_vm9, %v4181_v3 }
 0x164   : > { %v2078_v20 = vpop.permute.xlu0 %2077 }
 0x165   : > { %v2083_v38 = vsel %vm377_vm8, %v2078_v20, %v2080_v61 }
 0x166   : > { %2105 = vmatpush1.msra.mxu0 %v2083_v38 }
 0x167   : > { %2593 = vmatmul.mubr.msk.f32.vlgmr.msra.gmra.mrb[14].mxu0 %vm383_vm9, %v4181_v3 }
 0x171   : > { %v4265_v23 = vpop.permute.xlu1 %277 }
 0x17a   : > { %v524_v7 = vpop.f32.mrb[0].mxu1 }
 0x17b   : > { %v530_v8 = vadd.f32 %v524_v7, %v4265_v23  ;;  %v2742_v45 = vpop.f32.mrb[1].mxu1 }
 0x17d   : > { %v453_v4 = vpop.f32.mrb[0].mxu0  ;;  %534 = vst.msk [vmem:[%s4272_s9 + $0x10] sm:$0xff] %vm272_vm10, %v530_v8 }
 0x17e   : > { %v455_v3 = vpop.f32.mrb[1].mxu0  ;;  %v528_v16 = vadd.f32 %v453_v4, %v4265_v23 }
 0x17f   : > { %v529_v41 = vadd.f32 %v455_v3, %v4265_v23 }
 0x180   : > { %v2245_v26 = vfloor.f32 %v528_v16 }
 0x181   : > { %v2246_v10 = vfloor.f32 %v529_v41 }
 0x182   : > { %v2248_v62 = vmax.f32 %v2245_v26, 0.0 }
 0x183   : > { %v2249_v35 = vmax.f32 %v2246_v10, 0.0 }
 0x184   : > { %v2241_v12 = vld [vmem:[%s4272_s9 + $0x10] sm:$0xff]  ;;  %2251 = vst [vmem:[%s4272_s9] sm:$0xff] %v2248_v62  ;;  %v2254_v51 = vsub.f32 %v528_v16, %v2248_v62 }
 0x185   : > { %v2244_v28 = vadd.f32 %v2241_v12, %v2238_v6  ;;  %2252 = vst [vmem:[%s4272_s9 + $0x8] sm:$0xff] %v2249_v35  ;;  %v2255_v2 = vsub.f32 %v529_v41, %v2249_v35 }
 0x187   : > { %v2247_v22 = vfloor.f32 %v2244_v28 }
 0x189   : > { %v2250_v47 = vmax.f32 %v2247_v22, 0.0 }
 0x18b   : > { %2253 = vst.msk [vmem:[%s4272_s9 + $0x10] sm:$0xff] %vm272_vm10, %v2250_v47  ;;  %v2256_v37 = vsub.f32 %v2244_v28, %v2250_v47 }
 0x192   : > { %v767_v5 = vpop.f32.mrb[2].mxu1 }
 0x193   : > { %v773_v19 = vadd.f32 %v767_v5, %v4265_v23  ;;  %v2763_v29 = vpop.f32.mrb[3].mxu1 }
 0x195   : > { %v696_v58 = vpop.f32.mrb[2].mxu0  ;;  %2549 = vst.msk [vmem:[%s4272_s9 + $0x28] sm:$0xff] %vm272_vm10, %v773_v19 }
 0x196   : > { %v771_v56 = vadd.f32 %v696_v58, %v4265_v23  ;;  %v698_v31 = vpop.f32.mrb[3].mxu0 }
 0x197   : > { %v772_v40 = vadd.f32 %v698_v31, %v4265_v23 }
 0x198   : > { %v2260_v63 = vadd.f32 %v2254_v51, %v771_v56 }
 0x199   : > { %v2261_v36 = vadd.f32 %v2255_v2, %v772_v40 }
 0x19a   : > { %v2263_v42 = vfloor.f32 %v2260_v63 }
 0x19b   : > { %v2264_v1 = vfloor.f32 %v2261_v36 }
 0x19c   : > { %v2266_v44 = vmax.f32 %v2263_v42, 0.0  ;;  %v2600_v43 = vld [vmem:[%s4272_s9 + $0x28] sm:$0xff] }
 0x19d   : > { %v2267_v30 = vmax.f32 %v2264_v1, 0.0  ;;  %v2262_v46 = vadd.f32 %v2600_v43, %v2256_v37 }
 0x19e   : > { %2601 = vst [vmem:[%s4272_s9 + $0x18] sm:$0xff] %v2266_v44  ;;  %v2272_v14 = vsub.f32 %v2260_v63, %v2266_v44 }
 0x19f   : > { %2602 = vst [vmem:[%s4272_s9 + $0x20] sm:$0xff] %v2267_v30  ;;  %v2265_v25 = vfloor.f32 %v2262_v46  ;;  %v2273_v39 = vsub.f32 %v2261_v36, %v2267_v30 }
 0x1a1   : > { %v2268_v27 = vmax.f32 %v2265_v25, 0.0 }
 0x1a3   : > { %2603 = vst.msk [vmem:[%s4272_s9 + $0x28] sm:$0xff] %vm272_vm10, %v2268_v27  ;;  %v2274_v15 = vsub.f32 %v2262_v46, %v2268_v27 }
 0x1b2   : > { %v1010_v48 = vpop.f32.mrb[4].mxu1 }
 0x1b3   : > { %v1016_v13 = vadd.f32 %v1010_v48, %v4265_v23  ;;  %v2784_v49 = vpop.f32.mrb[5].mxu1 }
 0x1b5   : > { %2557 = vst.msk [vmem:[%s4272_s9 + $0x40] sm:$0xff] %vm272_vm10, %v1016_v13 }
 0x1b6   : > { %v939_v50 = vpop.f32.mrb[4].mxu0 }
 0x1b7   : > { %v1014_v52 = vadd.f32 %v939_v50, %v4265_v23  ;;  %v941_v24 = vpop.f32.mrb[5].mxu0 }
 0x1b8   : > { %v1015_v53 = vadd.f32 %v941_v24, %v4265_v23 }
 0x1b9   : > { %v2278_v33 = vadd.f32 %v2272_v14, %v1014_v52 }
 0x1ba   : > { %v2279_v34 = vadd.f32 %v2273_v39, %v1015_v53 }
 0x1bb   : > { %v2281_v55 = vfloor.f32 %v2278_v33 }
 0x1bc   : > { %v2282_v18 = vfloor.f32 %v2279_v34  ;;  %v2606_v57 = vld [vmem:[%s4272_s9 + $0x40] sm:$0xff] }
 0x1bd   : > { %v2284_v59 = vmax.f32 %v2281_v55, 0.0  ;;  %v2280_v21 = vadd.f32 %v2606_v57, %v2274_v15 }
 0x1be   : > { %v2285_v17 = vmax.f32 %v2282_v18, 0.0 }
 0x1bf   : > { %2607 = vst [vmem:[%s4272_s9 + $0x30] sm:$0xff] %v2284_v59  ;;  %v2283_v11 = vfloor.f32 %v2280_v21  ;;  %v2290_v61 = vsub.f32 %v2278_v33, %v2284_v59 }
 0x1c0   : > { %2608 = vst [vmem:[%s4272_s9 + $0x38] sm:$0xff] %v2285_v17  ;;  %v2291_v20 = vsub.f32 %v2279_v34, %v2285_v17 }
 0x1c1   : > { %v2286_v60 = vmax.f32 %v2283_v11, 0.0 }
 0x1c3   : > { %2609 = vst.msk [vmem:[%s4272_s9 + $0x40] sm:$0xff] %vm272_vm10, %v2286_v60  ;;  %v2292_v16 = vsub.f32 %v2280_v21, %v2286_v60 }
 0x1c8   : > { %v1253_v54 = vpop.f32.mrb[6].mxu1 }
 0x1c9   : > { %v1259_v32 = vadd.f32 %v1253_v54, %v4265_v23  ;;  %v2805_v0 = vpop.f32.mrb[7].mxu1 }
 0x1cb   : > { %2565 = vst.msk [vmem:[%s4272_s9 + $0x58] sm:$0xff] %vm272_vm10, %v1259_v32  ;;  %v1182_v9 = vpop.f32.mrb[6].mxu0 }
 0x1cc   : > { %v1257_v38 = vadd.f32 %v1182_v9, %v4265_v23  ;;  %v1184_v7 = vpop.f32.mrb[7].mxu0 }
 0x1cd   : > { %v1258_v8 = vadd.f32 %v1184_v7, %v4265_v23 }
 0x1ce   : > { %v2296_v45 = vadd.f32 %v2290_v61, %v1257_v38 }
 0x1cf   : > { %v2297_v4 = vadd.f32 %v2291_v20, %v1258_v8 }
 0x1d0   : > { %v2299_v3 = vfloor.f32 %v2296_v45 }
 0x1d1   : > { %v2300_v41 = vfloor.f32 %v2297_v4 }
 0x1d2   : > { %v2612_v6 = vld [vmem:[%s4272_s9 + $0x58] sm:$0xff]  ;;  %v2302_v26 = vmax.f32 %v2299_v3, 0.0 }
 0x1d3   : > { %v2298_v10 = vadd.f32 %v2612_v6, %v2292_v16  ;;  %v2303_v12 = vmax.f32 %v2300_v41, 0.0 }
 0x1d4   : > { %2613 = vst [vmem:[%s4272_s9 + $0x48] sm:$0xff] %v2302_v26  ;;  %v2308_v29 = vsub.f32 %v2296_v45, %v2302_v26 }
 0x1d5   : > { %v2301_v62 = vfloor.f32 %v2298_v10  ;;  %2614 = vst [vmem:[%s4272_s9 + $0x50] sm:$0xff] %v2303_v12  ;;  %v2309_v2 = vsub.f32 %v2297_v4, %v2303_v12 }
 0x1d7   : > { %v2304_v35 = vmax.f32 %v2301_v62, 0.0 }
 0x1d9   : > { %2615 = vst.msk [vmem:[%s4272_s9 + $0x58] sm:$0xff] %vm272_vm10, %v2304_v35  ;;  %v2310_v31 = vsub.f32 %v2298_v10, %v2304_v35 }
 0x1e5   : > { %v1496_v28 = vpop.f32.mrb[8].mxu1 }
 0x1e6   : > { %v1502_v22 = vadd.f32 %v1496_v28, %v4265_v23  ;;  %v2826_v47 = vpop.f32.mrb[9].mxu1 }
 0x1e8   : > { %2573 = vst.msk [vmem:[%s4272_s9 + $0x70] sm:$0xff] %vm272_vm10, %v1502_v22 }
 0x1ea   : > { %v1425_v5 = vpop.f32.mrb[8].mxu0 }
 0x1eb   : > { %v1500_v19 = vadd.f32 %v1425_v5, %v4265_v23  ;;  %v1427_v51 = vpop.f32.mrb[9].mxu0 }
 0x1ec   : > { %v1501_v58 = vadd.f32 %v1427_v51, %v4265_v23 }
 0x1ed   : > { %v2314_v56 = vadd.f32 %v2308_v29, %v1500_v19 }
 0x1ee   : > { %v2315_v40 = vadd.f32 %v2309_v2, %v1501_v58 }
 0x1ef   : > { %v2618_v63 = vld [vmem:[%s4272_s9 + $0x70] sm:$0xff]  ;;  %v2317_v36 = vfloor.f32 %v2314_v56 }
 0x1f0   : > { %v2316_v37 = vadd.f32 %v2618_v63, %v2310_v31  ;;  %v2318_v42 = vfloor.f32 %v2315_v40 }
 0x1f1   : > { %v2320_v1 = vmax.f32 %v2317_v36, 0.0 }
 0x1f2   : > { %v2319_v44 = vfloor.f32 %v2316_v37  ;;  %v2321_v43 = vmax.f32 %v2318_v42, 0.0 }
 0x1f3   : > { %2619 = vst [vmem:[%s4272_s9 + $0x60] sm:$0xff] %v2320_v1  ;;  %v2326_v49 = vsub.f32 %v2314_v56, %v2320_v1 }
 0x1f4   : > { %v2322_v30 = vmax.f32 %v2319_v44, 0.0  ;;  %2620 = vst [vmem:[%s4272_s9 + $0x68] sm:$0xff] %v2321_v43  ;;  %v2327_v39 = vsub.f32 %v2315_v40, %v2321_v43 }
 0x1f6   : > { %2621 = vst.msk [vmem:[%s4272_s9 + $0x70] sm:$0xff] %vm272_vm10, %v2322_v30  ;;  %v2328_v15 = vsub.f32 %v2316_v37, %v2322_v30 }
 0x1fd   : > { %v1739_v46 = vpop.f32.mrb[10].mxu1 }
 0x1fe   : > { %v1745_v25 = vadd.f32 %v1739_v46, %v4265_v23  ;;  %v2847_v27 = vpop.f32.mrb[11].mxu1 }
 0x1ff   : > { %v1668_v48 = vpop.f32.mrb[10].mxu0 }
 0x200   : > { %2581 = vst.msk [vmem:[%s4272_s9 + $0x88] sm:$0xff] %vm272_vm10, %v1745_v25  ;;  %v1743_v13 = vadd.f32 %v1668_v48, %v4265_v23  ;;  %v1670_v14 = vpop.f32.mrb[11].mxu0 }
 0x201   : > { %v1744_v50 = vadd.f32 %v1670_v14, %v4265_v23 }
 0x202   : > { %v2332_v52 = vadd.f32 %v2326_v49, %v1743_v13 }
 0x203   : > { %v2333_v24 = vadd.f32 %v2327_v39, %v1744_v50 }
 0x204   : > { %v2335_v53 = vfloor.f32 %v2332_v52 }
 0x205   : > { %v2336_v33 = vfloor.f32 %v2333_v24 }
 0x206   : > { %v2338_v34 = vmax.f32 %v2335_v53, 0.0 }
 0x207   : > { %v2624_v55 = vld [vmem:[%s4272_s9 + $0x88] sm:$0xff]  ;;  %v2339_v18 = vmax.f32 %v2336_v33, 0.0 }
 0x208   : > { %v2334_v57 = vadd.f32 %v2624_v55, %v2328_v15  ;;  %2625 = vst [vmem:[%s4272_s9 + $0x78] sm:$0xff] %v2338_v34  ;;  %v2344_v0 = vsub.f32 %v2332_v52, %v2338_v34 }
 0x209   : > { %2626 = vst [vmem:[%s4272_s9 + $0x80] sm:$0xff] %v2339_v18  ;;  %v2345_v20 = vsub.f32 %v2333_v24, %v2339_v18 }
 0x20a   : > { %v2337_v59 = vfloor.f32 %v2334_v57 }
 0x20c   : > { %v2340_v21 = vmax.f32 %v2337_v59, 0.0 }
 0x20e   : > { %2627 = vst.msk [vmem:[%s4272_s9 + $0x88] sm:$0xff] %vm272_vm10, %v2340_v21  ;;  %v2346_v7 = vsub.f32 %v2334_v57, %v2340_v21 }
 0x21d   : > { %v1982_v17 = vpop.f32.mrb[12].mxu1 }
 0x21e   : > { %v1988_v11 = vadd.f32 %v1982_v17, %v4265_v23  ;;  %v2868_v60 = vpop.f32.mrb[13].mxu1 }
 0x220   : > { %2589 = vst.msk [vmem:[%s4272_s9 + $0xa0] sm:$0xff] %vm272_vm10, %v1988_v11 }
 0x222   : > { %v1911_v54 = vpop.f32.mrb[12].mxu0 }
 0x223   : > { %v1986_v32 = vadd.f32 %v1911_v54, %v4265_v23  ;;  %v1913_v61 = vpop.f32.mrb[13].mxu0 }
 0x224   : > { %v1987_v9 = vadd.f32 %v1913_v61, %v4265_v23 }
 0x225   : > { %v2350_v38 = vadd.f32 %v2344_v0, %v1986_v32 }
 0x226   : > { %v2351_v8 = vadd.f32 %v2345_v20, %v1987_v9 }
 0x227   : > { %v2630_v45 = vld [vmem:[%s4272_s9 + $0xa0] sm:$0xff]  ;;  %v2353_v4 = vfloor.f32 %v2350_v38 }
 0x228   : > { %v2352_v3 = vadd.f32 %v2630_v45, %v2346_v7  ;;  %v2354_v16 = vfloor.f32 %v2351_v8 }
 0x229   : > { %v2356_v41 = vmax.f32 %v2353_v4, 0.0 }
 0x22a   : > { %v2355_v6 = vfloor.f32 %v2352_v3  ;;  %v2357_v26 = vmax.f32 %v2354_v16, 0.0 }
 0x22b   : > { %2631 = vst [vmem:[%s4272_s9 + $0x90] sm:$0xff] %v2356_v41  ;;  %v2362_v47 = vsub.f32 %v2350_v38, %v2356_v41 }
 0x22c   : > { %v2358_v10 = vmax.f32 %v2355_v6, 0.0  ;;  %2632 = vst [vmem:[%s4272_s9 + $0x98] sm:$0xff] %v2357_v26  ;;  %v2363_v29 = vsub.f32 %v2351_v8, %v2357_v26 }
 0x22e   : > { %2633 = vst.msk [vmem:[%s4272_s9 + $0xa0] sm:$0xff] %vm272_vm10, %v2358_v10  ;;  %v2364_v58 = vsub.f32 %v2352_v3, %v2358_v10 }
 0x235   : > { %v2225_v12 = vpop.f32.mrb[14].mxu1 }
 0x236   : > { %v2231_v62 = vadd.f32 %v2225_v12, %v4265_v23  ;;  %v2889_v35 = vpop.f32.mrb[15].mxu1 }
 0x238   : > { %2597 = vst.msk [vmem:[%s4272_s9 + $0xb8] sm:$0xff] %vm272_vm10, %v2231_v62 }
 0x23a   : > { %v2154_v28 = vpop.f32.mrb[14].mxu0 }
 0x23b   : > { %v2229_v22 = vadd.f32 %v2154_v28, %v4265_v23  ;;  %v2156_v5 = vpop.f32.mrb[15].mxu0 }
 0x23c   : > { %v2230_v19 = vadd.f32 %v2156_v5, %v4265_v23 }
 0x23d   : > { %v2368_v51 = vadd.f32 %v2362_v47, %v2229_v22 }
 0x23e   : > { %v2369_v2 = vadd.f32 %v2363_v29, %v2230_v19 }
 0x23f   : > { %v2636_v56 = vld [vmem:[%s4272_s9 + $0xb8] sm:$0xff]  ;;  %v2371_v31 = vfloor.f32 %v2368_v51 }
 0x240   : > { %v2370_v40 = vadd.f32 %v2636_v56, %v2364_v58  ;;  %v2372_v63 = vfloor.f32 %v2369_v2 }
 0x241   : > { %v2374_v36 = vmax.f32 %v2371_v31, 0.0 }
 0x242   : > { %v2373_v37 = vfloor.f32 %v2370_v40  ;;  %v2375_v42 = vmax.f32 %v2372_v63, 0.0 }
 0x243   : > { %2637 = vst [vmem:[%s4272_s9 + $0xa8] sm:$0xff] %v2374_v36 }
 0x244   : > { %v2376_v1 = vmax.f32 %v2373_v37, 0.0  ;;  %2638 = vst [vmem:[%s4272_s9 + $0xb0] sm:$0xff] %v2375_v42 }
 0x246   : > { %2639 = vst.msk [vmem:[%s4272_s9 + $0xb8] sm:$0xff] %vm272_vm10, %v2376_v1  ;;  %v2382_v44 = vsub.f32 %v2370_v40, %v2376_v1 }
 0x248   : > { %2385 = vst.msk [vmem:[#allocation2 + $0x10] sm:$0xff] %vm272_vm10, %v2382_v44 }
 0x249 PF: > { %s13_s14 = sadd.s32 1, %s3583_s14   ;;  %s4368_s12 = smov %s3579_s13 }
 0x24a   : > { %p10_p5 = scmp.ge.s32.totalorder %s13_s14, 4   ;;  %s4369_s13 = smov %s4371_s15 }
 0x24c   :  { %12 = sbr.rel (!%p10_p5) target bundleno = 2 (0x2), region = 86 }

</bundles_post_ra>
